<compile_context>
chip_gen: v6e
topology: v6e:2x2x1
jax: 0.10.0
libtpu: 0.0.40
codegen_flags: <defaults>
</compile_context>

<pallas_src>
import functools

import jax
import jax.numpy as jnp
from jax import lax
from jax.experimental import pallas as pl
from jax.experimental.pallas import tpu as pltpu

LANE = 128


def _round_up(v, m=LANE):
    return ((v + m - 1) // m) * m


def _gcn_kernel(a_ref, x_ref, w1_ref, w2_ref, w3_ref, lw_ref, p_ref, out_ref, *, B, N):
    bf16 = jnp.bfloat16
    hp = w1_ref.shape[1]
    cp = lw_ref.shape[1]

    a = a_ref[...]                     # [BN, BN] bf16 block-diagonal normalized adjacency
    x = x_ref[...]                     # [BN, Fp] bf16 stacked node features
    p = p_ref[...]                     # [16, Pw] f32 packed per-channel params

    b1, gn1_w, gn1_b, gn1_s = (p[i:i + 1, :hp] for i in range(0, 4))
    b2, gn2_w, gn2_b, gn2_s = (p[i:i + 1, :hp] for i in range(4, 8))
    b3 = p[8:9, :hp]
    lin_b = p[9:10, :cp]

    def conv(h_bf16, w_ref, bias):
        # GCNConv: A_hat @ (H W) + b   (PyG order: linear first, then propagate)
        hw = jnp.dot(h_bf16, w_ref[...], preferred_element_type=jnp.float32)
        return jnp.dot(a, hw.astype(bf16), preferred_element_type=jnp.float32) + bias

    def graph_norm(h, weight, bias, alpha, eps=1e-5):
        # PyG GraphNorm per graph:  out = h - mean(h)*alpha
        #                           y   = weight * out * rsqrt(mean(out^2) + eps) + bias
        # Fused single pass: E[h] and E[h^2] from the same tensor, then
        #   var = E[h^2] - mean^2 * (2*alpha - alpha^2)  (exact algebraic identity).
        hg = h.reshape(B, N, hp)                               # per-graph view
        m1 = jnp.mean(hg, axis=1, keepdims=True)               # [B,1,Hp]
        m2 = jnp.mean(hg * hg, axis=1, keepdims=True)          # [B,1,Hp]
        out = hg - m1 * alpha
        var = jnp.maximum(m2 - (m1 * m1) * (2.0 * alpha - alpha * alpha), 0.0)
        inv = lax.rsqrt(var + eps)                              # EUP rsqrt
        y = out * (weight * inv) + bias
        return y.reshape(B * N, hp)

    # ---- conv1 + ReLU + GraphNorm ----
    h = conv(x, w1_ref, b1)
    h = graph_norm(jnp.maximum(h, 0.0), gn1_w, gn1_b, gn1_s)

    # ---- conv2 + ReLU + GraphNorm ----
    h = conv(h.astype(bf16), w2_ref, b2)
    h = graph_norm(jnp.maximum(h, 0.0), gn2_w, gn2_b, gn2_s)

    # ---- conv3 (no activation / norm) ----
    h = conv(h.astype(bf16), w3_ref, b3)

    # ---- global_max_pool per graph over the node axis ----
    pooled = jnp.max(h.reshape(B, N, hp), axis=1)               # [B, Hp]

    # F.dropout(p=0.5) is identity in eval mode (see TODO above).

    logits = (jnp.dot(pooled.astype(bf16), lw_ref[...],
                      preferred_element_type=jnp.float32) + lin_b)   # [B, Cp]
    out_ref[...] = logits


def _pad2(m, rows, cols, dtype):
    out = jnp.zeros((rows, cols), dtype)
    return out.at[:m.shape[0], :m.shape[1]].set(m.astype(dtype))


def gcn_forward(x, a_norm, params):
    """x: [B, N, F] f32 node features, a_norm: [B, N, N] f32 normalized adjacency.
    Returns logits [B, C] f32 (one graph per batch entry, batch=None semantics)."""
    B, N, F = x.shape
    H = params["w1"].shape[1]
    C = params["lin_w"].shape[1]
    Fp, Hp, Cp = _round_up(F), _round_up(H), _round_up(C)
    Pw = max(Hp, Cp)
    BN = B * N
    bf16 = jnp.bfloat16

    # Stack all graphs' node features: [BN, Fp] bf16, lane-padded.
    xs = jnp.zeros((BN, Fp), bf16).at[:, :F].set(x.reshape(BN, F).astype(bf16))

    # Block-diagonal normalized adjacency: [BN, BN] bf16 (exact — off-block zeros).
    a_block = jnp.zeros((BN, BN), jnp.float32)
    for b in range(B):
        a_block = a_block.at[b * N:(b + 1) * N, b * N:(b + 1) * N].set(a_norm[b])
    a_block = a_block.astype(bf16)

    # Lane-padded bf16 weight matrices.
    w1 = _pad2(params["w1"], Fp, Hp, bf16)
    w2 = _pad2(params["w2"], Hp, Hp, bf16)
    w3 = _pad2(params["w3"], Hp, Hp, bf16)
    lin_w = _pad2(params["lin_w"], Hp, Cp, bf16)

    # Pack the ten f32 per-channel parameter rows into a single [16, Pw] array.
    pk = jnp.zeros((16, Pw), jnp.float32)
    for i, name in enumerate(["b1", "gn1_w", "gn1_b", "gn1_s",
                              "b2", "gn2_w", "gn2_b", "gn2_s",
                              "b3", "lin_b"]):
        v = params[name].reshape(-1).astype(jnp.float32)
        pk = pk.at[i, :v.shape[0]].set(v)

    vmem = pl.BlockSpec(memory_space=pltpu.MemorySpace.VMEM)   # whole array, VMEM-resident
    out = pl.pallas_call(
        functools.partial(_gcn_kernel, B=B, N=N),
        out_shape=jax.ShapeDtypeStruct((B, Cp), jnp.float32),
        in_specs=[vmem] * 7,
        out_specs=vmem,
    )(a_block, xs, w1, w2, w3, lin_w, pk)
    return out[:, :C]


def build_normalized_adjacency(edge_index, num_nodes):
    """Dense D^-1/2 (A + I) D^-1/2, matching PyG gcn_norm with add_self_loops=True
    (unweighted, de-duplicated edge_index)."""
    src, dst = edge_index
    a = jnp.zeros((num_nodes, num_nodes), jnp.float32).at[src, dst].set(1.0)
    a = a + jnp.eye(num_nodes, dtype=jnp.float32)
    deg = jnp.sum(a, axis=1)
    d_inv_sqrt = 1.0 / jnp.sqrt(deg)
    return a * d_inv_sqrt[:, None] * d_inv_sqrt[None, :]


def init_params(key, num_node_features, hidden, num_classes):
    ks = jax.random.split(key, 5)

    def glorot(k, fan_in, fan_out):
        lim = jnp.sqrt(6.0 / (fan_in + fan_out))
        return jax.random.uniform(k, (fan_in, fan_out), jnp.float32, -lim, lim)

    H = hidden
    return {
        "w1": glorot(ks[0], num_node_features, H), "b1": jnp.zeros((1, H), jnp.float32),
        "w2": glorot(ks[1], H, H),                 "b2": jnp.zeros((1, H), jnp.float32),
        "w3": glorot(ks[2], H, H),                 "b3": jnp.zeros((1, H), jnp.float32),
        # GraphNorm defaults: weight=1, bias=0, mean_scale=1
        "gn1_w": jnp.ones((1, H), jnp.float32), "gn1_b": jnp.zeros((1, H), jnp.float32),
        "gn1_s": jnp.ones((1, H), jnp.float32),
        "gn2_w": jnp.ones((1, H), jnp.float32), "gn2_b": jnp.zeros((1, H), jnp.float32),
        "gn2_s": jnp.ones((1, H), jnp.float32),
        # Linear(hidden, num_classes) stored pre-transposed as [H, C]
        "lin_w": glorot(ks[3], H, num_classes),
        "lin_b": jax.random.uniform(ks[4], (1, num_classes), jnp.float32,
                                    -1.0 / jnp.sqrt(H), 1.0 / jnp.sqrt(H)),
    }


if __name__ == "__main__":
    key = jax.random.PRNGKey(0)
    B = 8                  # graphs per call (stacked: B*N = 128 rows -> one MXU-friendly step)
    N = 16                 # nodes per graph
    F = 7                  # num_node_features (MUTAG-like)
    H = 20                 # hidden_channels
    C = 2                  # num_classes

    k_x, k_p = jax.random.split(key)
    x = jax.random.normal(k_x, (B, N, F), jnp.float32)

    def graph_adj(b):
        # Deterministic undirected ring plus a per-graph chord (offset 2+b).
        src_ring = jnp.arange(N, dtype=jnp.int32)
        dst_ring = (src_ring + 1) % N
        dst_chord = (src_ring + 2 + b) % N
        src = jnp.concatenate([src_ring, dst_ring, src_ring, dst_chord])
        dst = jnp.concatenate([dst_ring, src_ring, dst_chord, src_ring])
        return build_normalized_adjacency(jnp.stack([src, dst]), N)

    a_norm = jnp.stack([graph_adj(b) for b in range(B)])
    params = init_params(k_p, F, H, C)

    out = gcn_forward(x, a_norm, params)
    jax.block_until_ready(out)

    # Pure-JAX per-graph reference mirroring the kernel math (bf16 matmul operands,
    # f32 accumulation, f32 elementwise).
    def ref_forward(xg, ag, p):
        bf = jnp.bfloat16
        dot = lambda u, v: jnp.dot(u.astype(bf), v.astype(bf),
                                   preferred_element_type=jnp.float32)

        def gn(h, w, b, s, eps=1e-5):
            m = h.mean(0, keepdims=True)
            o = h - m * s
            v = (o * o).mean(0, keepdims=True)
            return o * (w * lax.rsqrt(v + eps)) + b

        h = dot(ag, dot(xg, p["w1"])) + p["b1"]
        h = gn(jnp.maximum(h, 0.0), p["gn1_w"], p["gn1_b"], p["gn1_s"])
        h = dot(ag, dot(h, p["w2"])) + p["b2"]
        h = gn(jnp.maximum(h, 0.0), p["gn2_w"], p["gn2_b"], p["gn2_s"])
        h = dot(ag, dot(h, p["w3"])) + p["b3"]
        pooled = h.max(0, keepdims=True)
        return dot(pooled, p["lin_w"]) + p["lin_b"]

    ref = jnp.concatenate([ref_forward(x[b], a_norm[b], params) for b in range(B)], axis=0)
    assert out.shape == (B, C)
    assert jnp.allclose(out, ref, atol=2e-3, rtol=2e-3), (out, ref)
    print("KERNEL_OK")
</pallas_src>

<mosaic_0001>
module attributes {stable_mosaic.version = 11 : i64} {
  func.func @_gcn_kernel(%arg0: memref<128x128xbf16, #tpu.memory_space<vmem>>, %arg1: memref<128x128xbf16, #tpu.memory_space<vmem>>, %arg2: memref<128x128xbf16, #tpu.memory_space<vmem>>, %arg3: memref<128x128xbf16, #tpu.memory_space<vmem>>, %arg4: memref<128x128xbf16, #tpu.memory_space<vmem>>, %arg5: memref<128x128xbf16, #tpu.memory_space<vmem>>, %arg6: memref<16x128xf32, #tpu.memory_space<vmem>>, %arg7: memref<8x128xf32, #tpu.memory_space<vmem>>) attributes {dimension_semantics = [], scalar_prefetch = 0 : i64, scratch_operands = 0 : i64, tpu.core_type = #tpu.core_type<tc>} {
    %c0 = arith.constant 0 : index
    %c0_0 = arith.constant 0 : index
    %0 = vector.load %arg0[%c0, %c0_0] : memref<128x128xbf16, #tpu.memory_space<vmem>>, vector<128x128xbf16>
    %c0_1 = arith.constant 0 : index
    %c0_2 = arith.constant 0 : index
    %1 = vector.load %arg1[%c0_1, %c0_2] : memref<128x128xbf16, #tpu.memory_space<vmem>>, vector<128x128xbf16>
    %c0_3 = arith.constant 0 : index
    %c0_4 = arith.constant 0 : index
    %2 = vector.load %arg6[%c0_3, %c0_4] : memref<16x128xf32, #tpu.memory_space<vmem>>, vector<16x128xf32>
    %3 = vector.extract_strided_slice %2 {offsets = [0, 0], sizes = [1, 128], strides = [1, 1]} : vector<16x128xf32> to vector<1x128xf32>
    %4 = vector.extract_strided_slice %2 {offsets = [1, 0], sizes = [1, 128], strides = [1, 1]} : vector<16x128xf32> to vector<1x128xf32>
    %5 = vector.extract_strided_slice %2 {offsets = [2, 0], sizes = [1, 128], strides = [1, 1]} : vector<16x128xf32> to vector<1x128xf32>
    %6 = vector.extract_strided_slice %2 {offsets = [3, 0], sizes = [1, 128], strides = [1, 1]} : vector<16x128xf32> to vector<1x128xf32>
    %7 = vector.extract_strided_slice %2 {offsets = [4, 0], sizes = [1, 128], strides = [1, 1]} : vector<16x128xf32> to vector<1x128xf32>
    %8 = vector.extract_strided_slice %2 {offsets = [5, 0], sizes = [1, 128], strides = [1, 1]} : vector<16x128xf32> to vector<1x128xf32>
    %9 = vector.extract_strided_slice %2 {offsets = [6, 0], sizes = [1, 128], strides = [1, 1]} : vector<16x128xf32> to vector<1x128xf32>
    %10 = vector.extract_strided_slice %2 {offsets = [7, 0], sizes = [1, 128], strides = [1, 1]} : vector<16x128xf32> to vector<1x128xf32>
    %11 = vector.extract_strided_slice %2 {offsets = [8, 0], sizes = [1, 128], strides = [1, 1]} : vector<16x128xf32> to vector<1x128xf32>
    %12 = vector.extract_strided_slice %2 {offsets = [9, 0], sizes = [1, 128], strides = [1, 1]} : vector<16x128xf32> to vector<1x128xf32>
    %c0_5 = arith.constant 0 : index
    %c0_6 = arith.constant 0 : index
    %13 = vector.load %arg2[%c0_5, %c0_6] : memref<128x128xbf16, #tpu.memory_space<vmem>>, vector<128x128xbf16>
    %cst = arith.constant dense<0.000000e+00> : vector<128x128xf32>
    %14 = tpu.matmul %1, %13, %cst {dimension_numbers = #tpu.dot_dimension_numbers<[1], [0], [0], [1], [0, 0, 1, 1], [], []>} : vector<128x128xbf16>, vector<128x128xbf16>, vector<128x128xf32> -> vector<128x128xf32>
    %15 = arith.truncf %14 : vector<128x128xf32> to vector<128x128xbf16>
    %cst_7 = arith.constant dense<0.000000e+00> : vector<128x128xf32>
    %16 = tpu.matmul %0, %15, %cst_7 {dimension_numbers = #tpu.dot_dimension_numbers<[1], [0], [0], [1], [0, 0, 1, 1], [], []>} : vector<128x128xbf16>, vector<128x128xbf16>, vector<128x128xf32> -> vector<128x128xf32>
    %17 = vector.broadcast %3 : vector<1x128xf32> to vector<128x128xf32>
    %18 = arith.addf %16, %17 : vector<128x128xf32>
    %cst_8 = arith.constant 0.000000e+00 : f32
    %19 = vector.broadcast %cst_8 : f32 to vector<128x128xf32>
    %20 = arith.maximumf %18, %19 : vector<128x128xf32>
    %21 = vector.shape_cast %20 : vector<128x128xf32> to vector<8x16x128xf32>
    %cst_9 = arith.constant dense<0.000000e+00> : vector<8x128xf32>
    %22 = vector.multi_reduction <add>, %21, %cst_9 [1] : vector<8x16x128xf32> to vector<8x128xf32>
    %23 = vector.shape_cast %22 : vector<8x128xf32> to vector<8x1x128xf32>
    %cst_10 = arith.constant 1.600000e+01 : f32
    %24 = vector.broadcast %cst_10 : f32 to vector<8x1x128xf32>
    %25 = arith.divf %23, %24 : vector<8x1x128xf32>
    %26 = arith.mulf %21, %21 : vector<8x16x128xf32>
    %cst_11 = arith.constant dense<0.000000e+00> : vector<8x128xf32>
    %27 = vector.multi_reduction <add>, %26, %cst_11 [1] : vector<8x16x128xf32> to vector<8x128xf32>
    %28 = vector.shape_cast %27 : vector<8x128xf32> to vector<8x1x128xf32>
    %cst_12 = arith.constant 1.600000e+01 : f32
    %29 = vector.broadcast %cst_12 : f32 to vector<8x1x128xf32>
    %30 = arith.divf %28, %29 : vector<8x1x128xf32>
    %31 = vector.shape_cast %6 : vector<1x128xf32> to vector<1x1x128xf32>
    %32 = vector.broadcast %31 : vector<1x1x128xf32> to vector<8x1x128xf32>
    %33 = arith.mulf %25, %32 : vector<8x1x128xf32>
    %34 = vector.broadcast %33 : vector<8x1x128xf32> to vector<8x16x128xf32>
    %35 = arith.subf %21, %34 : vector<8x16x128xf32>
    %36 = arith.mulf %25, %25 : vector<8x1x128xf32>
    %cst_13 = arith.constant 2.000000e+00 : f32
    %37 = vector.broadcast %cst_13 : f32 to vector<1x128xf32>
    %38 = arith.mulf %37, %6 : vector<1x128xf32>
    %39 = arith.mulf %6, %6 : vector<1x128xf32>
    %40 = arith.subf %38, %39 : vector<1x128xf32>
    %41 = vector.shape_cast %40 : vector<1x128xf32> to vector<1x1x128xf32>
    %42 = vector.broadcast %41 : vector<1x1x128xf32> to vector<8x1x128xf32>
    %43 = arith.mulf %36, %42 : vector<8x1x128xf32>
    %44 = arith.subf %30, %43 : vector<8x1x128xf32>
    %cst_14 = arith.constant 0.000000e+00 : f32
    %45 = vector.broadcast %cst_14 : f32 to vector<8x1x128xf32>
    %46 = arith.maximumf %44, %45 : vector<8x1x128xf32>
    %cst_15 = arith.constant 9.99999974E-6 : f32
    %47 = vector.broadcast %cst_15 : f32 to vector<8x1x128xf32>
    %48 = arith.addf %46, %47 : vector<8x1x128xf32>
    %49 = math.rsqrt %48 : vector<8x1x128xf32>
    %50 = vector.shape_cast %4 : vector<1x128xf32> to vector<1x1x128xf32>
    %51 = vector.broadcast %50 : vector<1x1x128xf32> to vector<8x1x128xf32>
    %52 = arith.mulf %51, %49 : vector<8x1x128xf32>
    %53 = vector.broadcast %52 : vector<8x1x128xf32> to vector<8x16x128xf32>
    %54 = arith.mulf %35, %53 : vector<8x16x128xf32>
    %55 = vector.shape_cast %5 : vector<1x128xf32> to vector<1x1x128xf32>
    %56 = vector.broadcast %55 : vector<1x1x128xf32> to vector<8x16x128xf32>
    %57 = arith.addf %54, %56 : vector<8x16x128xf32>
    %58 = vector.shape_cast %57 : vector<8x16x128xf32> to vector<128x128xf32>
    %59 = arith.truncf %58 : vector<128x128xf32> to vector<128x128xbf16>
    %c0_16 = arith.constant 0 : index
    %c0_17 = arith.constant 0 : index
    %60 = vector.load %arg3[%c0_16, %c0_17] : memref<128x128xbf16, #tpu.memory_space<vmem>>, vector<128x128xbf16>
    %cst_18 = arith.constant dense<0.000000e+00> : vector<128x128xf32>
    %61 = tpu.matmul %59, %60, %cst_18 {dimension_numbers = #tpu.dot_dimension_numbers<[1], [0], [0], [1], [0, 0, 1, 1], [], []>} : vector<128x128xbf16>, vector<128x128xbf16>, vector<128x128xf32> -> vector<128x128xf32>
    %62 = arith.truncf %61 : vector<128x128xf32> to vector<128x128xbf16>
    %cst_19 = arith.constant dense<0.000000e+00> : vector<128x128xf32>
    %63 = tpu.matmul %0, %62, %cst_19 {dimension_numbers = #tpu.dot_dimension_numbers<[1], [0], [0], [1], [0, 0, 1, 1], [], []>} : vector<128x128xbf16>, vector<128x128xbf16>, vector<128x128xf32> -> vector<128x128xf32>
    %64 = vector.broadcast %7 : vector<1x128xf32> to vector<128x128xf32>
    %65 = arith.addf %63, %64 : vector<128x128xf32>
    %cst_20 = arith.constant 0.000000e+00 : f32
    %66 = vector.broadcast %cst_20 : f32 to vector<128x128xf32>
    %67 = arith.maximumf %65, %66 : vector<128x128xf32>
    %68 = vector.shape_cast %67 : vector<128x128xf32> to vector<8x16x128xf32>
    %cst_21 = arith.constant dense<0.000000e+00> : vector<8x128xf32>
    %69 = vector.multi_reduction <add>, %68, %cst_21 [1] : vector<8x16x128xf32> to vector<8x128xf32>
    %70 = vector.shape_cast %69 : vector<8x128xf32> to vector<8x1x128xf32>
    %cst_22 = arith.constant 1.600000e+01 : f32
    %71 = vector.broadcast %cst_22 : f32 to vector<8x1x128xf32>
    %72 = arith.divf %70, %71 : vector<8x1x128xf32>
    %73 = arith.mulf %68, %68 : vector<8x16x128xf32>
    %cst_23 = arith.constant dense<0.000000e+00> : vector<8x128xf32>
    %74 = vector.multi_reduction <add>, %73, %cst_23 [1] : vector<8x16x128xf32> to vector<8x128xf32>
    %75 = vector.shape_cast %74 : vector<8x128xf32> to vector<8x1x128xf32>
    %cst_24 = arith.constant 1.600000e+01 : f32
    %76 = vector.broadcast %cst_24 : f32 to vector<8x1x128xf32>
    %77 = arith.divf %75, %76 : vector<8x1x128xf32>
    %78 = vector.shape_cast %10 : vector<1x128xf32> to vector<1x1x128xf32>
    %79 = vector.broadcast %78 : vector<1x1x128xf32> to vector<8x1x128xf32>
    %80 = arith.mulf %72, %79 : vector<8x1x128xf32>
    %81 = vector.broadcast %80 : vector<8x1x128xf32> to vector<8x16x128xf32>
    %82 = arith.subf %68, %81 : vector<8x16x128xf32>
    %83 = arith.mulf %72, %72 : vector<8x1x128xf32>
    %cst_25 = arith.constant 2.000000e+00 : f32
    %84 = vector.broadcast %cst_25 : f32 to vector<1x128xf32>
    %85 = arith.mulf %84, %10 : vector<1x128xf32>
    %86 = arith.mulf %10, %10 : vector<1x128xf32>
    %87 = arith.subf %85, %86 : vector<1x128xf32>
    %88 = vector.shape_cast %87 : vector<1x128xf32> to vector<1x1x128xf32>
    %89 = vector.broadcast %88 : vector<1x1x128xf32> to vector<8x1x128xf32>
    %90 = arith.mulf %83, %89 : vector<8x1x128xf32>
    %91 = arith.subf %77, %90 : vector<8x1x128xf32>
    %cst_26 = arith.constant 0.000000e+00 : f32
    %92 = vector.broadcast %cst_26 : f32 to vector<8x1x128xf32>
    %93 = arith.maximumf %91, %92 : vector<8x1x128xf32>
    %cst_27 = arith.constant 9.99999974E-6 : f32
    %94 = vector.broadcast %cst_27 : f32 to vector<8x1x128xf32>
    %95 = arith.addf %93, %94 : vector<8x1x128xf32>
    %96 = math.rsqrt %95 : vector<8x1x128xf32>
    %97 = vector.shape_cast %8 : vector<1x128xf32> to vector<1x1x128xf32>
    %98 = vector.broadcast %97 : vector<1x1x128xf32> to vector<8x1x128xf32>
    %99 = arith.mulf %98, %96 : vector<8x1x128xf32>
    %100 = vector.broadcast %99 : vector<8x1x128xf32> to vector<8x16x128xf32>
    %101 = arith.mulf %82, %100 : vector<8x16x128xf32>
    %102 = vector.shape_cast %9 : vector<1x128xf32> to vector<1x1x128xf32>
    %103 = vector.broadcast %102 : vector<1x1x128xf32> to vector<8x16x128xf32>
    %104 = arith.addf %101, %103 : vector<8x16x128xf32>
    %105 = vector.shape_cast %104 : vector<8x16x128xf32> to vector<128x128xf32>
    %106 = arith.truncf %105 : vector<128x128xf32> to vector<128x128xbf16>
    %c0_28 = arith.constant 0 : index
    %c0_29 = arith.constant 0 : index
    %107 = vector.load %arg4[%c0_28, %c0_29] : memref<128x128xbf16, #tpu.memory_space<vmem>>, vector<128x128xbf16>
    %cst_30 = arith.constant dense<0.000000e+00> : vector<128x128xf32>
    %108 = tpu.matmul %106, %107, %cst_30 {dimension_numbers = #tpu.dot_dimension_numbers<[1], [0], [0], [1], [0, 0, 1, 1], [], []>} : vector<128x128xbf16>, vector<128x128xbf16>, vector<128x128xf32> -> vector<128x128xf32>
    %109 = arith.truncf %108 : vector<128x128xf32> to vector<128x128xbf16>
    %cst_31 = arith.constant dense<0.000000e+00> : vector<128x128xf32>
    %110 = tpu.matmul %0, %109, %cst_31 {dimension_numbers = #tpu.dot_dimension_numbers<[1], [0], [0], [1], [0, 0, 1, 1], [], []>} : vector<128x128xbf16>, vector<128x128xbf16>, vector<128x128xf32> -> vector<128x128xf32>
    %111 = vector.broadcast %11 : vector<1x128xf32> to vector<128x128xf32>
    %112 = arith.addf %110, %111 : vector<128x128xf32>
    %113 = vector.shape_cast %112 : vector<128x128xf32> to vector<8x16x128xf32>
    %cst_32 = arith.constant dense<0xFF800000> : vector<8x128xf32>
    %114 = vector.multi_reduction <maximumf>, %113, %cst_32 [1] : vector<8x16x128xf32> to vector<8x128xf32>
    %115 = arith.truncf %114 : vector<8x128xf32> to vector<8x128xbf16>
    %c0_33 = arith.constant 0 : index
    %c0_34 = arith.constant 0 : index
    %116 = vector.load %arg5[%c0_33, %c0_34] : memref<128x128xbf16, #tpu.memory_space<vmem>>, vector<128x128xbf16>
    %cst_35 = arith.constant dense<0.000000e+00> : vector<8x128xf32>
    %117 = tpu.matmul %115, %116, %cst_35 {dimension_numbers = #tpu.dot_dimension_numbers<[1], [0], [0], [1], [0, 0, 1, 1], [], []>} : vector<8x128xbf16>, vector<128x128xbf16>, vector<8x128xf32> -> vector<8x128xf32>
    %118 = vector.broadcast %12 : vector<1x128xf32> to vector<8x128xf32>
    %119 = arith.addf %117, %118 : vector<8x128xf32>
    %c0_36 = arith.constant 0 : index
    %c0_37 = arith.constant 0 : index
    %120 = vector.load %arg7[%c0_36, %c0_37] : memref<8x128xf32, #tpu.memory_space<vmem>>, vector<8x128xf32>
    tpu.vector_store %arg7[%c0_36, %c0_37], %119 {strides = array<i32>} : memref<8x128xf32, #tpu.memory_space<vmem>>, vector<8x128xf32>,
    return
  }
}

</mosaic_0001>

<bundles_post_ra>
// kernel: tpu_custom_call.1
= control target key start
LH: loop header
LB: loop body
LE: loop exit
PB: predicated region body
PF: predicated region fallthrough
CT: control target
= control target key end

     0   :  { %12 = vsyncpa [#allocation3], 0  ;;  %s3306_s0 = inlined_call_operand.hbm [shape: bf16[128,128], index: 0, kind: input, shape index: {}]   ;;  %s3307_s1 = inlined_call_operand.hbm [shape: bf16[128,128], index: 1, kind: input, shape index: {}]   ;;  %s3308_s2 = inlined_call_operand.hbm [shape: bf16[128,128], index: 2, kind: input, shape index: {}]   ;;  %s3309_s3 = inlined_call_operand.hbm [shape: bf16[128,128], index: 3, kind: input, shape index: {}]   ;;  %s3310_s4 = inlined_call_operand.hbm [shape: bf16[128,128], index: 4, kind: input, shape index: {}]   ;;  %s3311_s5 = inlined_call_operand.hbm [shape: bf16[128,128], index: 5, kind: input, shape index: {}]   ;;  %s3312_s6 = inlined_call_operand.hbm [shape: f32[16,128], index: 6, kind: input, shape index: {}]   ;;  %s3313_s7 = inlined_call_operand.hbm [shape: f32[8,128], index: 7, kind: output, shape index: {}]  }
   0x1   :  { %13 = vsyncpa [#allocation6], 0 }
   0x2   :  { %14 = vsyncpa [#allocation9], 0 }
   0x3   :  { %15 = vsyncpa [#allocation12], 0 }
   0x4   :  { %16 = vsyncpa [#allocation4], 0  ;;  %s2671_s24 = smov [#allocation5]   ;;  %s2672_s26 = smov [#allocation8]  }
   0x5   :  { %s34_s25 = sshll.u32 %s2671_s24, 4  ;;  %s58_s27 = sshll.u32 %s2672_s26, 4  ;;  %s35_s25 = int_to_ptr.vmem [resolvable:$true] %s34_s25  ;;  %s59_s27 = int_to_ptr.vmem [resolvable:$true] %s58_s27 }
   0x6   :  { %s2509_s28 = scalar_lea.vmem %s35_s25, 1024  ;;  %p2514_p1 = scmp.lt.s32.totalorder %s35_s25, %s35_s25 }
   0x7   :  { %p2510_p0 = scmp.ne.s32.totalorder %s35_s25, %s2509_s28  ;;  %p2515_p2 = scmp.lt.s32.totalorder %s2509_s28, %s2509_s28 }
   0x9   :  { %p2516_p3 = por %p2515_p2, %p2514_p1 }
   0xb   :  { %p2517_p4 = pnand %p2516_p3, %p2510_p0 }
   0xd   :  { %2520 = shalt.err (!%p2517_p4)
}
   0xe   :  { %s2673_s29 = smov 64   ;;  %s2674_s30 = smov 4  }
   0xf   :  { %40 = dma.hbm_to_vmem [thread:$0]  %s3307_s1, 1024, %s35_s25, [#allocation6], %s2673_s29, %s2673_s29, %s2674_s30  }
  0x10   :  { %s2529_s10 = scalar_lea.vmem %s59_s27, 1024  ;;  %p2534_p6 = scmp.lt.s32.totalorder %s59_s27, %s59_s27 }
  0x11   :  { %p2530_p5 = scmp.ne.s32.totalorder %s59_s27, %s2529_s10  ;;  %p2535_p7 = scmp.lt.s32.totalorder %s2529_s10, %s2529_s10 }
  0x13   :  { %p2536_p8 = por %p2535_p7, %p2534_p6 }
  0x15   :  { %p2537_p9 = pnand %p2536_p8, %p2530_p5 }
  0x17   :  { %2540 = shalt.err (!%p2537_p9)
}
  0x18   :  { %64 = dma.hbm_to_vmem [thread:$0]  %s3309_s3, 1024, %s59_s27, [#allocation9], %s2673_s29, %s2673_s29, %s2674_s30  }
  0x19   :  { %s2675_s13 = smov [#allocation11]   ;;  %s2676_s15 = smov [#allocation2]  }
  0x1a   :  { %s82_s14 = sshll.u32 %s2675_s13, 4  ;;  %s22_s16 = sshll.u32 %s2676_s15, 4  ;;  %s83_s14 = int_to_ptr.vmem [resolvable:$true] %s82_s14  ;;  %s23_s16 = int_to_ptr.vmem [resolvable:$true] %s22_s16 }
  0x1b   :  { %s2549_s1 = scalar_lea.vmem %s83_s14, 1024  ;;  %p2554_p11 = scmp.lt.s32.totalorder %s83_s14, %s83_s14 }
  0x1c   :  { %p2550_p10 = scmp.ne.s32.totalorder %s83_s14, %s2549_s1  ;;  %p2555_p12 = scmp.lt.s32.totalorder %s2549_s1, %s2549_s1 }
  0x1e   :  { %p2556_p13 = por %p2555_p12, %p2554_p11 }
  0x20   :  { %p2557_p0 = pnand %p2556_p13, %p2550_p10 }
  0x22   :  { %2560 = shalt.err (!%p2557_p0)
}
  0x23   :  { %88 = dma.hbm_to_vmem [thread:$0]  %s3311_s5, 1024, %s83_s14, [#allocation12], %s2673_s29, %s2673_s29, %s2674_s30  }
  0x24   :  { %s2569_s3 = scalar_lea.vmem %s23_s16, 1024  ;;  %p2574_p2 = scmp.lt.s32.totalorder %s23_s16, %s23_s16 }
  0x25   :  { %p2570_p1 = scmp.ne.s32.totalorder %s23_s16, %s2569_s3  ;;  %p2575_p3 = scmp.lt.s32.totalorder %s2569_s3, %s2569_s3 }
  0x27   :  { %p2576_p4 = por %p2575_p3, %p2574_p2 }
  0x29   :  { %p2577_p5 = pnand %p2576_p4, %p2570_p1 }
  0x2b   :  { %2580 = shalt.err (!%p2577_p5)
}
  0x2c   :  { %28 = dma.hbm_to_vmem [thread:$0]  %s3306_s0, 1024, %s23_s16, [#allocation3], %s2673_s29, %s2673_s29, %s2674_s30  }
  0x2d   :  { %s2677_s21 = smov [#allocation7]   ;;  %s2678_s23 = smov [#allocation10]  }
  0x2e   :  { %s46_s22 = sshll.u32 %s2677_s21, 4  ;;  %s70_s24 = sshll.u32 %s2678_s23, 4  ;;  %s47_s22 = int_to_ptr.vmem [resolvable:$true] %s46_s22  ;;  %s71_s24 = int_to_ptr.vmem [resolvable:$true] %s70_s24 }
  0x2f   :  { %s2589_s5 = scalar_lea.vmem %s47_s22, 1024  ;;  %p2594_p7 = scmp.lt.s32.totalorder %s47_s22, %s47_s22 }
  0x30   :  { %p2590_p6 = scmp.ne.s32.totalorder %s47_s22, %s2589_s5  ;;  %p2595_p8 = scmp.lt.s32.totalorder %s2589_s5, %s2589_s5 }
  0x32   :  { %p2596_p9 = por %p2595_p8, %p2594_p7 }
  0x34   :  { %p2597_p10 = pnand %p2596_p9, %p2590_p6 }
  0x36   :  { %2600 = shalt.err (!%p2597_p10)
}
  0x37   :  { %52 = dma.hbm_to_vmem [thread:$0]  %s3308_s2, 1024, %s47_s22, [#allocation6], %s2673_s29, %s2673_s29, %s2674_s30  }
  0x38   :  { %s2609_s0 = scalar_lea.vmem %s71_s24, 1024  ;;  %p2614_p12 = scmp.lt.s32.totalorder %s71_s24, %s71_s24 }
  0x39   :  { %p2610_p11 = scmp.ne.s32.totalorder %s71_s24, %s2609_s0  ;;  %p2615_p13 = scmp.lt.s32.totalorder %s2609_s0, %s2609_s0 }
  0x3b   :  { %p2616_p0 = por %p2615_p13, %p2614_p12 }
  0x3d   :  { %p2617_p1 = pnand %p2616_p0, %p2610_p11 }
  0x3f   :  { %2620 = shalt.err (!%p2617_p1)
}
  0x40   :  { %76 = dma.hbm_to_vmem [thread:$0]  %s3310_s4, 1024, %s71_s24, [#allocation9], %s2673_s29, %s2673_s29, %s2674_s30  }
  0x41   :  { %s2679_s8 = smov [#allocation13]  }
  0x42   :  { %s94_s9 = sshll.u32 %s2679_s8, 4  ;;  %s95_s9 = int_to_ptr.vmem [resolvable:$true] %s94_s9 }
  0x43   :  { %s2629_s10 = scalar_lea.vmem %s95_s9, 256  ;;  %p2634_p3 = scmp.lt.s32.totalorder %s95_s9, %s95_s9 }
  0x44   :  { %p2630_p2 = scmp.ne.s32.totalorder %s95_s9, %s2629_s10  ;;  %p2635_p4 = scmp.lt.s32.totalorder %s2629_s10, %s2629_s10 }
  0x46   :  { %p2636_p5 = por %p2635_p4, %p2634_p3 }
  0x48   :  { %p2637_p6 = pnand %p2636_p5, %p2630_p2 }
  0x4a   :  { %2640 = shalt.err (!%p2637_p6)
}
  0x4b   :  { %s2680_s2 = smov 128   ;;  %s2681_s11 = smov 8  }
  0x4c   :  { %100 = dma.hbm_to_vmem [thread:$0]  %s3312_s6, 256, %s95_s9, [#allocation12], %s2680_s2, %s2680_s2, %s2681_s11  }
  0x4d   :  { %2661 = dma.done.wait [#allocation3], 1024  }
  0x4e   :  { %2662 = vsyncadd [#allocation3], 4294966272 }
  0x4f   :  { %2663 = dma.done.wait [#allocation6], 2048  }
  0x50   :  { %2664 = vsyncadd [#allocation6], 4294965248 }
  0x51   :  { %2665 = dma.done.wait [#allocation9], 2048  }
  0x52   :  { %2666 = vsyncadd [#allocation9], 4294965248 }
  0x53   :  { %2667 = dma.done.wait [#allocation12], 1280  }
  0x54   :  { %2668 = vsyncadd [#allocation12], 4294966016  ;;  %v2413_v0 = vld [vmem:[#allocation7 + $0x38] sm:$0xff]   ;;  %v2414_v1 = vld [vmem:[#allocation7 + $0x30] sm:$0xff]   ;;  %v374_v56 = vlaneseq  ;;  %vm2683_vm0 = vmmov 0   ;;  %vm1911_vm1 = vcmask 1041409  }
  0x55   :  { %2187 = vmatprep.subr.bf16.mxu0 %v2413_v0  ;;  %v2415_v2 = vld [vmem:[#allocation7 + $0x28] sm:$0xff]   ;;  %v2416_v3 = vld [vmem:[#allocation7 + $0x20] sm:$0xff]   ;;  %v2417_v5 = vld [vmem:[#allocation7 + $0x18] sm:$0xff]   ;;  %vm1913_vm2 = vcmask 1042434   ;;  %vm1915_vm3 = vcmask 1043459   ;;  %vm1917_vm4 = vcmask 1044484  }
  0x56   :  { %2188 = vmatpush3.bf16.msra.mxu0 %v2413_v0  ;;  %v2421_v4 = vld [vmem:[#allocation5] sm:$0xff]   ;;  %v2418_v6 = vld [vmem:[#allocation7 + $0x10] sm:$0xff]   ;;  %v2419_v7 = vld [vmem:[#allocation7 + $0x8] sm:$0xff]   ;;  %v2789_v57 = vshrl.u32 %v374_v56, 7  ;;  %vm1919_vm5 = vcmask 1045509   ;;  %vm1921_vm6 = vcmask 1046534  }
  0x57   :  { %2189 = vmatprep.subr.bf16.mxu0 %v2414_v1  ;;  %2203 = vmatprep.mubr.bf16.mxu0 %v2421_v4  ;;  %v2420_v8 = vld [vmem:[#allocation7] sm:$0xff]   ;;  %v2422_v9 = vld [vmem:[#allocation5 + $0x8] sm:$0xff]   ;;  %v2423_v10 = vld [vmem:[#allocation5 + $0x10] sm:$0xff]   ;;  %vm1923_vm7 = vcmask 1047559   ;;  %s2684_s4 = smov [#allocation14]  }
  0x58   :  { %v2424_v11 = vld [vmem:[#allocation5 + $0x18] sm:$0xff]   ;;  %v2425_v12 = vld [vmem:[#allocation5 + $0x20] sm:$0xff]   ;;  %v2426_v13 = vld [vmem:[#allocation5 + $0x28] sm:$0xff]   ;;  %v3314_v58 = vsub.s32 0, %v2789_v57  ;;  %s2022_s6 = sshll.u32 %s2684_s4, 4  ;;  %s2023_s6 = int_to_ptr.vmem [resolvable:$true] %s2022_s6 }
  0x59   :  { %v2427_v14 = vld [vmem:[#allocation5 + $0x30] sm:$0xff]   ;;  %v2428_v15 = vld [vmem:[#allocation5 + $0x38] sm:$0xff]   ;;  %v2764_v16 = vld [vmem:[#allocation2] sm:$0xff]   ;;  %s2641_s29 = scalar_lea.vmem %s2023_s6, 128  ;;  %p2646_p8 = scmp.lt.s32.totalorder %s2023_s6, %s2023_s6 }
  0x5a   :  { %2190 = vmatpush3.bf16.msra.mxu0 %v2414_v1  ;;  %2235 = vmatprep.mubr.bf16.mxu1 %v2764_v16  ;;  %v2767_v41 = vld [vmem:[#allocation2 + $0x8] sm:$0xff]   ;;  %v2769_v42 = vld [vmem:[#allocation2 + $0x10] sm:$0xff]   ;;  %v2773_v43 = vld [vmem:[#allocation2 + $0x18] sm:$0xff]   ;;  %p2642_p7 = scmp.ne.s32.totalorder %s2023_s6, %s2641_s29  ;;  %p2647_p9 = scmp.lt.s32.totalorder %s2641_s29, %s2641_s29 }
  0x5b   :  { %2191 = vmatprep.subr.bf16.mxu0 %v2415_v2  ;;  %v2775_v44 = vld [vmem:[#allocation2 + $0x20] sm:$0xff]   ;;  %v2779_v45 = vld [vmem:[#allocation2 + $0x28] sm:$0xff]   ;;  %v2781_v46 = vld [vmem:[#allocation2 + $0x30] sm:$0xff]  }
  0x5c   :  { %v2785_v47 = vld [vmem:[#allocation2 + $0x38] sm:$0xff]   ;;  %v2438_v49 = vld [vmem:[#allocation8 + $0x30] sm:$0xff]   ;;  %v2439_v50 = vld [vmem:[#allocation8 + $0x28] sm:$0xff]   ;;  %p2648_p10 = por %p2647_p9, %p2646_p8 }
  0x5d   :  { %v2437_v48 = vld [vmem:[#allocation8 + $0x38] sm:$0xff]   ;;  %v2440_v51 = vld [vmem:[#allocation8 + $0x20] sm:$0xff]   ;;  %v2442_v53 = vld [vmem:[#allocation8 + $0x10] sm:$0xff]  }
  0x5e   :  { %2192 = vmatpush3.bf16.msra.mxu0 %v2415_v2  ;;  %v2441_v52 = vld [vmem:[#allocation8 + $0x18] sm:$0xff]   ;;  %v2443_v54 = vld [vmem:[#allocation8 + $0x8] sm:$0xff]   ;;  %v2444_v55 = vld [vmem:[#allocation8] sm:$0xff]   ;;  %p2649_p11 = pnand %p2648_p10, %p2642_p7 }
  0x5f   :  { %2193 = vmatprep.subr.bf16.mxu0 %v2416_v3  ;;  %v2792_v59 = vld [vmem:[#allocation13] sm:$0xff] }
  0x60   :  { %v2797_v60 = vrot.slane %v2792_v59, %v3314_v58 }
  0x62   :  { %2194 = vmatpush3.bf16.msra.mxu0 %v2416_v3 }
  0x63   :  { %2195 = vmatprep.subr.bf16.mxu0 %v2417_v5 }
  0x66   :  { %2196 = vmatpush3.bf16.msra.mxu0 %v2417_v5 }
  0x67   :  { %2197 = vmatprep.subr.bf16.mxu0 %v2418_v6 }
  0x6a   :  { %2198 = vmatpush3.bf16.msra.mxu0 %v2418_v6 }
  0x6b   :  { %2199 = vmatprep.subr.bf16.mxu0 %v2419_v7 }
  0x6e   :  { %2200 = vmatpush3.bf16.msra.mxu0 %v2419_v7 }
  0x6f   :  { %2201 = vmatprep.subr.bf16.mxu0 %v2420_v8 }
  0x72   :  { %2202 = vmatpush3.bf16.msra.mxu0 %v2420_v8 }
  0x73   :  { %2251 = vmatprep.subr.bf16.mxu0 %v2437_v48 }
  0x75   :  { %2204 = vmatmul.mubr.bf16.vlgmr.msra.gmra.mxu0 %v2422_v9 }
  0x76   :  { %2207 = vmatprep.mubr.bf16.mxu0 %v2423_v10  ;;  %2252 = vmatpush3.bf16.msra.mxu0 %v2437_v48 }
  0x77   :  { %2253 = vmatprep.subr.bf16.mxu0 %v2438_v49 }
  0x7a   :  { %2254 = vmatpush3.bf16.msra.mxu0 %v2438_v49 }
  0x7b   :  { %2255 = vmatprep.subr.bf16.mxu0 %v2439_v50 }
  0x7d   :  { %2208 = vmatmul.mubr.bf16.gmra.mxu0 %v2424_v11 }
  0x7e   :  { %2211 = vmatprep.mubr.bf16.mxu0 %v2425_v12  ;;  %2256 = vmatpush3.bf16.msra.mxu0 %v2439_v50 }
  0x7f   :  { %2257 = vmatprep.subr.bf16.mxu0 %v2440_v51 }
  0x82   :  { %2258 = vmatpush3.bf16.msra.mxu0 %v2440_v51 }
  0x83   :  { %2259 = vmatprep.subr.bf16.mxu0 %v2441_v52 }
  0x85   :  { %2212 = vmatmul.mubr.bf16.gmra.mxu0 %v2426_v13 }
  0x86   :  { %2215 = vmatprep.mubr.bf16.mxu0 %v2427_v14  ;;  %2260 = vmatpush3.bf16.msra.mxu0 %v2441_v52 }
  0x87   :  { %2261 = vmatprep.subr.bf16.mxu0 %v2442_v53 }
  0x8a   :  { %2262 = vmatpush3.bf16.msra.mxu0 %v2442_v53 }
  0x8b   :  { %2263 = vmatprep.subr.bf16.mxu0 %v2443_v54 }
  0x8d   :  { %2216 = vmatmul.mubr.bf16.gmra.mxu0 %v2428_v15 }
  0x8e   :  { %2264 = vmatpush3.bf16.msra.mxu0 %v2443_v54 }
  0x8f   :  { %2265 = vmatprep.subr.bf16.mxu0 %v2444_v55 }
  0x92   :  { %2266 = vmatpush3.bf16.msra.mxu0 %v2444_v55 }
 0x135   :  { %v2205_v17 = vpop.f32.mrf.mxu0 }
 0x137   :  { %v303_v18 = vpop.f32.mrf.mxu0 }
 0x139   :  { %v2206_v19 = vpop.f32.mrf.mxu0 }
 0x13a   :  { %v367_v39 = vpack.c.bf16 %v2206_v19, %v2205_v17 }
 0x13b   :  { %v306_v20 = vpop.f32.mrf.mxu0 }
 0x13c   :  { %v366_v40 = vpack.c.bf16 %v306_v20, %v303_v18 }
 0x13d   :  { %v2209_v21 = vpop.f32.mrf.mxu0 }
 0x13f   :  { %v319_v22 = vpop.f32.mrf.mxu0 }
 0x141   :  { %v2210_v23 = vpop.f32.mrf.mxu0 }
 0x142   :  { %v369_v37 = vpack.c.bf16 %v2210_v23, %v2209_v21  ;;  %v748_v21 = vmul.f32 2.0, %v2792_v59 }
 0x143   :  { %v322_v24 = vpop.f32.mrf.mxu0 }
 0x144   :  { %v368_v38 = vpack.c.bf16 %v322_v24, %v319_v22  ;;  %v749_v22 = vmul.f32 %v2792_v59, %v2792_v59 }
 0x145   :  { %v2213_v25 = vpop.f32.mrf.mxu0 }
 0x147   :  { %v335_v26 = vpop.f32.mrf.mxu0 }
 0x149   :  { %v2214_v27 = vpop.f32.mrf.mxu0 }
 0x14a   :  { %v371_v35 = vpack.c.bf16 %v2214_v27, %v2213_v25 }
 0x14b   :  { %v338_v28 = vpop.f32.mrf.mxu0 }
 0x14c   :  { %v370_v36 = vpack.c.bf16 %v338_v28, %v335_v26 }
 0x14d   :  { %v2217_v29 = vpop.f32.mrf.mxu0 }
 0x14f   :  { %v351_v30 = vpop.f32.mrf.mxu0 }
 0x151   :  { %v2218_v31 = vpop.f32.mrf.mxu0 }
 0x152   :  { %v373_v32 = vpack.c.bf16 %v2218_v31, %v2217_v29 }
 0x153   :  { %v354_v33 = vpop.f32.mrf.mxu0 }
 0x154   :  { %v372_v34 = vpack.c.bf16 %v354_v33, %v351_v30  ;;  %2219 = vmatprep.subr.bf16.mxu1 %v373_v32 }
 0x155   :  { %2220 = vmatpush3.bf16.msra.mxu1 %v373_v32 }
 0x156   :  { %2221 = vmatprep.subr.bf16.mxu1 %v372_v34 }
 0x159   :  { %2222 = vmatpush3.bf16.msra.mxu1 %v372_v34 }
 0x15a   :  { %2223 = vmatprep.subr.bf16.mxu1 %v371_v35 }
 0x15d   :  { %2224 = vmatpush3.bf16.msra.mxu1 %v371_v35 }
 0x15e   :  { %2225 = vmatprep.subr.bf16.mxu1 %v370_v36 }
 0x161   :  { %2226 = vmatpush3.bf16.msra.mxu1 %v370_v36 }
 0x162   :  { %2227 = vmatprep.subr.bf16.mxu1 %v369_v37 }
 0x165   :  { %2228 = vmatpush3.bf16.msra.mxu1 %v369_v37  ;;  %v2833_v37 = vsub.f32 %v748_v21, %v749_v22 }
 0x166   :  { %2229 = vmatprep.subr.bf16.mxu1 %v368_v38 }
 0x169   :  { %2230 = vmatpush3.bf16.msra.mxu1 %v368_v38 }
 0x16a   :  { %2231 = vmatprep.subr.bf16.mxu1 %v367_v39 }
 0x16d   :  { %2232 = vmatpush3.bf16.msra.mxu1 %v367_v39 }
 0x16e   :  { %2233 = vmatprep.subr.bf16.mxu1 %v366_v40 }
 0x171   :  { %2234 = vmatpush3.bf16.msra.mxu1 %v366_v40 }
 0x174   :  { %2236 = vmatmul.mubr.bf16.vlgmr.msra.gmra.mxu1 %v2767_v41 }
 0x175   :  { %2239 = vmatprep.mubr.bf16.mxu1 %v2769_v42 }
 0x17c   :  { %2240 = vmatmul.mubr.bf16.gmra.mxu1 %v2773_v43 }
 0x17d   :  { %2243 = vmatprep.mubr.bf16.mxu1 %v2775_v44 }
 0x184   :  { %2244 = vmatmul.mubr.bf16.gmra.mxu1 %v2779_v45 }
 0x185   :  { %2247 = vmatprep.mubr.bf16.mxu1 %v2781_v46 }
 0x18c   :  { %2248 = vmatmul.mubr.bf16.gmra.mxu1 %v2785_v47 }
 0x18d   :  { %2299 = vmatprep.mubr.bf16.mxu1 %v2764_v16 }
 0x234   :  { %v2237_v61 = vpop.f32.mrf.mxu1 }
 0x235   :  { %v469_v62 = vadd.f32 %v2237_v61, %v2797_v60 }
 0x236   :  { %v460_v63 = vpop.f32.mrf.mxu1 }
 0x237   :  { %v461_v0 = vadd.f32 %v460_v63, %v2797_v60  ;;  %v2801_v1 = vmax.f32 %v469_v62, 0.0 }
 0x238   :  { %v2238_v2 = vpop.f32.mrf.mxu1 }
 0x239   :  { %v472_v3 = vadd.f32 %v2238_v2, %v2797_v60  ;;  %v2804_v4 = vmax.f32 %v461_v0, 0.0  ;;  %v606_v8 = vmul.f32 %v2801_v1, %v2801_v1 }
 0x23a   :  { %v463_v5 = vpop.f32.mrf.mxu1 }
 0x23b   :  { %v2806_v6 = vmax.f32 %v472_v3, 0.0  ;;  %v464_v7 = vadd.f32 %v463_v5, %v2797_v60  ;;  %v604_v14 = vmul.f32 %v2804_v4, %v2804_v4 }
 0x23c   :  { %v2241_v9 = vpop.f32.mrf.mxu1 }
 0x23d   :  { %v546_v10 = vadd.f32 %v2806_v6, %v2801_v1  ;;  %v607_v11 = vmul.f32 %v2806_v6, %v2806_v6  ;;  %v2815_v12 = vmax.f32 %v464_v7, 0.0  ;;  %v485_v13 = vadd.f32 %v2241_v9, %v2797_v60 }
 0x23e   :  { %v476_v15 = vpop.f32.mrf.mxu1 }
 0x23f   :  { %v547_v17 = vrot.slane %v546_v10, 4  ;;  %v627_v18 = vadd.f32 %v607_v11, %v606_v8  ;;  %v539_v19 = vadd.f32 %v2815_v12, %v2804_v4  ;;  %v605_v20 = vmul.f32 %v2815_v12, %v2815_v12 }
 0x240   :  { %v2827_v23 = vmax.f32 %v485_v13, 0.0  ;;  %v477_v24 = vadd.f32 %v476_v15, %v2797_v60  ;;  %v2242_v25 = vpop.f32.mrf.mxu1 }
 0x241   :  { %v548_v26 = vadd.f32 %v547_v17, %v546_v10  ;;  %v628_v27 = vrot.slane %v627_v18, 4  ;;  %v540_v28 = vrot.slane %v539_v19, 4  ;;  %v620_v29 = vadd.f32 %v605_v20, %v604_v14 }
 0x242   :  { %v2830_v30 = vmax.f32 %v477_v24, 0.0  ;;  %v488_v31 = vadd.f32 %v2242_v25, %v2797_v60  ;;  %v479_v32 = vpop.f32.mrf.mxu1  ;;  %v610_v38 = vmul.f32 %v2827_v23, %v2827_v23 }
 0x243   :  { %v549_v33 = vrot.slane %v548_v26, 2  ;;  %v629_v34 = vadd.f32 %v628_v27, %v627_v18  ;;  %v541_v35 = vadd.f32 %v540_v28, %v539_v19  ;;  %v621_v36 = vrot.slane %v620_v29, 4 }
 0x244   :  { %v2837_v39 = vmax.f32 %v488_v31, 0.0  ;;  %v480_v40 = vadd.f32 %v479_v32, %v2797_v60  ;;  %v2245_v48 = vpop.f32.mrf.mxu1  ;;  %v608_v53 = vmul.f32 %v2830_v30, %v2830_v30 }
 0x245   :  { %v550_v49 = vadd.f32 %v549_v33, %v548_v26  ;;  %v630_v50 = vrot.slane %v629_v34, 2  ;;  %v542_v51 = vrot.slane %v541_v35, 2  ;;  %v622_v52 = vadd.f32 %v621_v36, %v620_v29 }
 0x246   :  { %v560_v54 = vadd.f32 %v2837_v39, %v2827_v23  ;;  %v611_v55 = vmul.f32 %v2837_v39, %v2837_v39  ;;  %v2846_v56 = vmax.f32 %v480_v40, 0.0  ;;  %v492_v8 = vpop.f32.mrf.mxu1 }
 0x247   :  { %v551_v61 = vrot.slane %v550_v49, 1  ;;  %v631_v62 = vadd.f32 %v630_v50, %v629_v34  ;;  %v543_v63 = vadd.f32 %v542_v51, %v541_v35  ;;  %v623_v0 = vrot.slane %v622_v52, 2 }
 0x248   :  { %v561_v2 = vrot.slane %v560_v54, 4  ;;  %v641_v3 = vadd.f32 %v611_v55, %v610_v38  ;;  %v553_v5 = vadd.f32 %v2846_v56, %v2830_v30  ;;  %v609_v7 = vmul.f32 %v2846_v56, %v2846_v56  ;;  %v2246_v27 = vpop.f32.mrf.mxu1 }
 0x249   :  { %v552_v9 = vadd.f32 %v551_v61, %v550_v49  ;;  %v632_v10 = vrot.slane %v631_v62, 1  ;;  %v544_v11 = vrot.slane %v543_v63, 1  ;;  %v624_v13 = vadd.f32 %v623_v0, %v622_v52 }
 0x24a   :  { %v562_v14 = vadd.f32 %v561_v2, %v560_v54  ;;  %v642_v15 = vrot.slane %v641_v3, 4  ;;  %v554_v17 = vrot.slane %v553_v5, 4  ;;  %v634_v18 = vadd.f32 %v609_v7, %v608_v53  ;;  %v495_v52 = vpop.f32.mrf.mxu1 }
 0x24b   :  { %v597_v19 = vmul.f32 0.0625, %v552_v9  ;;  %v633_v20 = vadd.f32 %v632_v10, %v631_v62  ;;  %v545_v21 = vadd.f32 %v544_v11, %v543_v63  ;;  %v625_v22 = vrot.slane %v624_v13, 1 }
 0x24c   :  { %v563_v24 = vrot.slane %v562_v14, 2  ;;  %v643_v25 = vadd.f32 %v642_v15, %v641_v3  ;;  %v555_v26 = vadd.f32 %v554_v17, %v553_v5  ;;  %v635_v40 = vrot.slane %v634_v18, 4  ;;  %v2249_v11 = vpop.f32.mrf.mxu1 }
 0x24d   :  { %v741_v28 = vmul.f32 %v597_v19, %v597_v19  ;;  %v2852_v29 = vmul.f32 0.0625, %v545_v21  ;;  %v626_v31 = vadd.f32 %v625_v22, %v624_v13  ;;  %v677_v35 = vmul.f32 0.0625, %v633_v20 }
 0x24e   :  { %v564_v32 = vadd.f32 %v563_v24, %v562_v14  ;;  %v644_v33 = vrot.slane %v643_v25, 2  ;;  %v556_v34 = vrot.slane %v555_v26, 2  ;;  %v636_v2 = vadd.f32 %v635_v40, %v634_v18 }
 0x24f   :  { %v752_v36 = vmul.f32 %v2833_v37, %v741_v28  ;;  %v740_v38 = vmul.f32 %v2852_v29, %v2852_v29  ;;  %v676_v54 = vmul.f32 0.0625, %v626_v31  ;;  %v501_v3 = vadd.f32 %v2245_v48, %v2797_v60 }
 0x250   :  { %v565_v49 = vrot.slane %v564_v32, 1  ;;  %v645_v50 = vadd.f32 %v644_v33, %v643_v25  ;;  %v557_v51 = vadd.f32 %v556_v34, %v555_v26  ;;  %v637_v14 = vrot.slane %v636_v2, 2  ;;  %v2869_v26 = vpop.f32.mrf.mxu1 }
 0x251   :  { %v760_v53 = vsub.f32 %v677_v35, %v752_v36  ;;  %v751_v55 = vmul.f32 %v2833_v37, %v740_v38  ;;  %v873_v20 = vsub.s32 2, %v2789_v57  ;;  %v2867_v25 = vmax.f32 %v501_v3, 0.0 }
 0x252   :  { %v566_v61 = vadd.f32 %v565_v49, %v564_v32  ;;  %v646_v62 = vrot.slane %v645_v50, 1  ;;  %v558_v63 = vrot.slane %v557_v51, 1  ;;  %v638_v18 = vadd.f32 %v637_v14, %v636_v2 }
 0x253   :  { %v768_v0 = vmax.f32 %v760_v53, 0.0  ;;  %v759_v5 = vsub.f32 %v676_v54, %v751_v55  ;;  %v493_v32 = vadd.f32 %v492_v8, %v2797_v60  ;;  %v504_v33 = vadd.f32 %v2246_v27, %v2797_v60  ;;  %v2250_v53 = vpop.f32.mrf.mxu1 }
 0x254   :  { %v2859_v7 = vmul.f32 0.0625, %v566_v61  ;;  %v647_v9 = vadd.f32 %v646_v62, %v645_v50  ;;  %v559_v10 = vadd.f32 %v558_v63, %v557_v51  ;;  %v639_v28 = vrot.slane %v638_v18, 1 }
 0x255   :  { %v776_v13 = vadd.f32 1e-05, %v768_v0  ;;  %v767_v15 = vmax.f32 %v759_v5, 0.0  ;;  %v2876_v34 = vsub.s32 3, %v2789_v57  ;;  %v685_v36 = vmul.f32 %v597_v19, %v2792_v59 }
 0x256   :  { %v743_v17 = vmul.f32 %v2859_v7, %v2859_v7  ;;  %v2864_v21 = vmul.f32 0.0625, %v559_v10  ;;  %v679_v48 = vmul.f32 0.0625, %v647_v9  ;;  %v2880_v38 = vsub.s32 1, %v2789_v57 }
 0x257   :  { %2461 = vrsqrt.f32 %v776_v13  ;;  %v775_v22 = vadd.f32 1e-05, %v767_v15  ;;  %v640_v40 = vadd.f32 %v639_v28, %v638_v18  ;;  %v2883_v51 = vmax.f32 %v504_v33, 0.0 }
 0x258   :  { %v754_v24 = vmul.f32 %v2833_v37, %v743_v17  ;;  %v742_v31 = vmul.f32 %v2864_v21, %v2864_v21  ;;  %v496_v8 = vadd.f32 %v495_v52, %v2797_v60  ;;  %v517_v27 = vadd.f32 %v2249_v11, %v2797_v60 }
 0x259   :  { %2463 = vrsqrt.f32 %v775_v22  ;;  %v2888_v54 = vrot.slane %v2792_v59, %v873_v20  ;;  %v678_v55 = vmul.f32 0.0625, %v640_v40  ;;  %v614_v19 = vmul.f32 %v2867_v25, %v2867_v25 }
 0x25a   :  { %v762_v35 = vsub.f32 %v679_v48, %v754_v24  ;;  %v753_v49 = vmul.f32 %v2833_v37, %v742_v31  ;;  %v2892_v61 = vmax.f32 %v493_v32, 0.0  ;;  %v574_v63 = vadd.f32 %v2883_v51, %v2867_v25 }
 0x25b   :  { %v615_v0 = vmul.f32 %v2883_v51, %v2883_v51  ;;  %v2898_v52 = vmax.f32 %v496_v8, 0.0  ;;  %v2901_v2 = vrot.slane %v685_v36, %v2876_v34  ;;  %v2903_v5 = vmax.f32 %v517_v27, 0.0 }
 0x25c   :  { %v770_v50 = vmax.f32 %v762_v35, 0.0  ;;  %v761_v3 = vsub.f32 %v678_v55, %v753_v49  ;;  %v520_v9 = vadd.f32 %v2250_v53, %v2797_v60  ;;  %v684_v10 = vmul.f32 %v2852_v29, %v2792_v59 }
 0x25d   :  { %v575_v11 = vrot.slane %v574_v63, 4  ;;  %v655_v13 = vadd.f32 %v615_v0, %v614_v19  ;;  %v567_v14 = vadd.f32 %v2898_v52, %v2892_v61  ;;  %v612_v17 = vmul.f32 %v2892_v61, %v2892_v61 }
 0x25e   :  { %v778_v62 = vadd.f32 1e-05, %v770_v50  ;;  %v769_v15 = vmax.f32 %v761_v3, 0.0  ;;  %v613_v20 = vmul.f32 %v2898_v52, %v2898_v52  ;;  %v2914_v24 = vmax.f32 %v520_v9, 0.0 }
 0x25f   :  { %v576_v18 = vadd.f32 %v575_v11, %v574_v63  ;;  %v656_v22 = vrot.slane %v655_v13, 4  ;;  %v568_v48 = vrot.slane %v567_v14, 4  ;;  %v726_v29 = vsub.f32 %v2801_v1, %v2901_v2 }
 0x260   :  { %2465 = vrsqrt.f32 %v778_v62  ;;  %v777_v28 = vadd.f32 1e-05, %v769_v15  ;;  %v648_v31 = vadd.f32 %v613_v20, %v612_v17  ;;  %v618_v32 = vmul.f32 %v2903_v5, %v2903_v5 }
 0x261   :  { %v577_v35 = vrot.slane %v576_v18, 2  ;;  %v657_v36 = vadd.f32 %v656_v22, %v655_v13  ;;  %v569_v40 = vadd.f32 %v568_v48, %v567_v14  ;;  %v588_v49 = vadd.f32 %v2914_v24, %v2903_v5 }
 0x262   :  { %2467 = vrsqrt.f32 %v777_v28  ;;  %v649_v8 = vrot.slane %v648_v31, 4  ;;  %v619_v27 = vmul.f32 %v2914_v24, %v2914_v24  ;;  %v727_v0 = vsub.f32 %v2806_v6, %v2901_v2  ;;  %v511_v28 = vpop.f32.mrf.mxu1 }
 0x263   :  { %v578_v53 = vadd.f32 %v577_v35, %v576_v18  ;;  %v658_v55 = vrot.slane %v657_v36, 2  ;;  %v570_v19 = vrot.slane %v569_v40, 2  ;;  %v589_v62 = vrot.slane %v588_v49, 4 }
 0x264   :  { %v2462_v33 = vpop.eup %2461  ;;  %v2927_v3 = vrot.slane %v684_v10, %v2876_v34  ;;  %v686_v9 = vmul.f32 %v2864_v21, %v2792_v59  ;;  %v650_v11 = vadd.f32 %v649_v8, %v648_v31  ;;  %v669_v17 = vadd.f32 %v619_v27, %v618_v32 }
 0x265   :  { %v800_v50 = vrot.slane %v2462_v33, 2  ;;  %v579_v13 = vrot.slane %v578_v53, 1  ;;  %v659_v14 = vadd.f32 %v658_v55, %v657_v36  ;;  %v571_v15 = vadd.f32 %v570_v19, %v569_v40 }
 0x266   :  { %v2464_v63 = vpop.eup %2463  ;;  %v687_v18 = vmul.f32 %v2859_v7, %v2792_v59  ;;  %v651_v22 = vrot.slane %v650_v11, 2  ;;  %v590_v48 = vadd.f32 %v589_v62, %v588_v49  ;;  %v2935_v58 = vrot.slane %v686_v9, %v2876_v34 }
 0x267   :  { %v799_v20 = vrot.slane %v2464_v63, 2  ;;  %v816_v6 = vmul.f32 %v800_v50, %v2792_v59  ;;  %v580_v33 = vadd.f32 %v579_v13, %v578_v53  ;;  %v660_v10 = vrot.slane %v659_v14, 1 }
 0x268   :  { %v572_v35 = vrot.slane %v571_v15, 1  ;;  %v652_v21 = vadd.f32 %v651_v22, %v650_v11  ;;  %v509_v31 = vadd.f32 %v2869_v26, %v2797_v60  ;;  %v591_v32 = vrot.slane %v590_v48, 2 }
 0x269   :  { %v2939_v36 = vmul.f32 0.0625, %v580_v33  ;;  %v670_v7 = vrot.slane %v669_v17, 4  ;;  %v512_v49 = vadd.f32 %v511_v28, %v2797_v60  ;;  %v815_v8 = vmul.f32 %v799_v20, %v2792_v59 }
 0x26a   :  { %v573_v40 = vadd.f32 %v572_v35, %v571_v15  ;;  %v661_v50 = vadd.f32 %v660_v10, %v659_v14  ;;  %v653_v27 = vrot.slane %v652_v21, 1  ;;  %v592_v53 = vadd.f32 %v591_v32, %v590_v48 }
 0x26b   :  { %v830_v19 = vrot.slane %v816_v6, %v2880_v38  ;;  %v724_v62 = vsub.f32 %v2804_v4, %v2927_v3  ;;  %v725_v26 = vsub.f32 %v2815_v12, %v2927_v3  ;;  %v2949_v63 = vrot.slane %v687_v18, %v2876_v34 }
 0x26c   :  { %v728_v60 = vsub.f32 %v2830_v30, %v2935_v58  ;;  %v745_v9 = vmul.f32 %v2939_v36, %v2939_v36  ;;  %v2955_v11 = vmul.f32 0.0625, %v573_v40  ;;  %v2957_v13 = vmax.f32 %v509_v31, 0.0 }
 0x26d   :  { %v2466_v55 = vpop.eup %2465  ;;  %v654_v14 = vadd.f32 %v653_v27, %v652_v21  ;;  %v593_v15 = vrot.slane %v592_v53, 1  ;;  %v671_v20 = vadd.f32 %v670_v7, %v669_v17  ;;  %v2959_v4 = vmax.f32 %v512_v49, 0.0 }
 0x26e   :  { %v826_v12 = vrot.slane %v815_v8, %v2880_v38  ;;  %v681_v3 = vmul.f32 0.0625, %v661_v50  ;;  %v756_v18 = vmul.f32 %v2833_v37, %v745_v9  ;;  %v744_v30 = vmul.f32 %v2955_v11, %v2955_v11 }
 0x26f   :  { %v2468_v22 = vpop.eup %2467  ;;  %v857_v48 = vmul.f32 %v830_v19, %v726_v29  ;;  %v802_v28 = vrot.slane %v2466_v55, 2  ;;  %v729_v6 = vsub.f32 %v2846_v56, %v2935_v58  ;;  %v594_v17 = vadd.f32 %v593_v15, %v592_v53 }
 0x270   :  { %v858_v33 = vmul.f32 %v830_v19, %v727_v0  ;;  %v801_v10 = vrot.slane %v2468_v22, 2  ;;  %v764_v35 = vsub.f32 %v681_v3, %v756_v18  ;;  %v755_v21 = vmul.f32 %v2833_v37, %v744_v30 }
 0x271   :  { %v680_v31 = vmul.f32 0.0625, %v654_v14  ;;  %v2971_v32 = vmul.f32 0.0625, %v594_v17  ;;  %v672_v40 = vrot.slane %v671_v20, 2  ;;  %v581_v7 = vadd.f32 %v2959_v4, %v2957_v13 }
 0x272   :  { %v856_v49 = vmul.f32 %v826_v12, %v725_v26  ;;  %v817_v1 = vmul.f32 %v801_v10, %v2792_v59  ;;  %v772_v2 = vmax.f32 %v764_v35, 0.0  ;;  %v616_v58 = vmul.f32 %v2957_v13, %v2957_v13 }
 0x273   :  { %v818_v56 = vmul.f32 %v802_v28, %v2792_v59  ;;  %v763_v29 = vsub.f32 %v680_v31, %v755_v21  ;;  %v673_v0 = vadd.f32 %v672_v40, %v671_v20  ;;  %v747_v8 = vmul.f32 %v2971_v32, %v2971_v32 }
 0x274   :  { %v834_v50 = vrot.slane %v817_v1, %v2880_v38  ;;  %v780_v27 = vadd.f32 1e-05, %v772_v2  ;;  %v582_v53 = vrot.slane %v581_v7, 4  ;;  %v617_v55 = vmul.f32 %v2959_v4, %v2959_v4 }
 0x275   :  { %v877_v19 = vadd.f32 %v2888_v54, %v857_v48  ;;  %v878_v26 = vadd.f32 %v2888_v54, %v858_v33  ;;  %v771_v9 = vmax.f32 %v763_v29, 0.0  ;;  %v674_v14 = vrot.slane %v673_v0, 1 }
 0x276   :  { %v860_v15 = vmul.f32 %v834_v50, %v729_v6  ;;  %2469 = vrsqrt.f32 %v780_v27  ;;  %v583_v3 = vadd.f32 %v582_v53, %v581_v7  ;;  %v662_v20 = vadd.f32 %v617_v55, %v616_v58 }
 0x277   :  { %v838_v18 = vrot.slane %v818_v56, %v2880_v38  ;;  %v779_v30 = vadd.f32 1e-05, %v771_v9  ;;  %v675_v22 = vadd.f32 %v674_v14, %v673_v0  ;;  %v758_v28 = vmul.f32 %v2833_v37, %v747_v8 }
 0x278   :  { %v584_v17 = vrot.slane %v583_v3, 2  ;;  %v663_v10 = vrot.slane %v662_v20, 4  ;;  %v855_v35 = vmul.f32 %v826_v12, %v724_v62  ;;  %v876_v21 = vadd.f32 %v2888_v54, %v856_v49 }
 0x279   :  { %2471 = vrsqrt.f32 %v779_v30  ;;  %v683_v48 = vmul.f32 0.0625, %v675_v22  ;;  %v859_v33 = vmul.f32 %v834_v50, %v728_v60  ;;  %v880_v31 = vadd.f32 %v2888_v54, %v860_v15 }
 0x27a   :  { %v585_v6 = vadd.f32 %v584_v17, %v583_v3  ;;  %v664_v40 = vadd.f32 %v663_v10, %v662_v20  ;;  %v875_v7 = vadd.f32 %v2888_v54, %v855_v35  ;;  %v730_v1 = vsub.f32 %v2827_v23, %v2949_v63 }
 0x27b   :  { %v731_v2 = vsub.f32 %v2837_v39, %v2949_v63  ;;  %v766_v58 = vsub.f32 %v683_v48, %v758_v28  ;;  %v879_v62 = vadd.f32 %v2888_v54, %v859_v33  ;;  %v892_v12 = vpack.c.bf16 %v878_v26, %v877_v19 }
 0x27c   :  { %v586_v49 = vrot.slane %v585_v6, 1  ;;  %v665_v56 = vrot.slane %v664_v40, 2  ;;  %v891_v29 = vpack.c.bf16 %v876_v21, %v875_v7  ;;  %v861_v50 = vmul.f32 %v838_v18, %v730_v1 }
 0x27d   :  { %v862_v60 = vmul.f32 %v838_v18, %v731_v2  ;;  %v774_v0 = vmax.f32 %v766_v58, 0.0  ;;  %v893_v8 = vpack.c.bf16 %v880_v31, %v879_v62  ;;  %v689_v23 = vmul.f32 %v2939_v36, %v2792_v59 }
 0x27e   :  { %v587_v27 = vadd.f32 %v586_v49, %v585_v6  ;;  %v666_v53 = vadd.f32 %v665_v56, %v664_v40  ;;  %2267 = vmatprep.mubr.bf16.mxu0 %v891_v29  ;;  %v881_v19 = vadd.f32 %v2888_v54, %v861_v50  ;;  %v688_v3 = vmul.f32 %v2955_v11, %v2792_v59 }
 0x27f   :  { %v782_v55 = vadd.f32 1e-05, %v774_v0  ;;  %2268 = vmatmul.mubr.bf16.vlgmr.msra.gmra.mxu0 %v892_v12  ;;  %v882_v26 = vadd.f32 %v2888_v54, %v862_v60  ;;  %v715_v20 = vrot.slane %v689_v23, %v2876_v34 }
 0x280   :  { %v602_v39 = vmul.f32 0.0625, %v587_v27  ;;  %v667_v63 = vrot.slane %v666_v53, 1  ;;  %2271 = vmatprep.mubr.bf16.mxu0 %v893_v8  ;;  %v711_v35 = vrot.slane %v688_v3, %v2876_v34 }
 0x281   :  { %2473 = vrsqrt.f32 %v782_v55  ;;  %v894_v22 = vpack.c.bf16 %v882_v26, %v881_v19  ;;  %v734_v48 = vsub.f32 %v2867_v25, %v715_v20  ;;  %v735_v33 = vsub.f32 %v2883_v51, %v715_v20 }
 0x282   :  { %v668_v9 = vadd.f32 %v667_v63, %v666_v53  ;;  %v746_v14 = vmul.f32 %v602_v39, %v602_v39  ;;  %v732_v2 = vsub.f32 %v2892_v61, %v711_v35  ;;  %v733_v58 = vsub.f32 %v2898_v52, %v711_v35 }
 0x283   :  { %v2470_v15 = vpop.eup %2469  ;;  %v691_v61 = vmul.f32 %v2971_v32, %v2792_v59  ;;  %v690_v27 = vmul.f32 %v602_v39, %v2792_v59 }
 0x284   :  { %v804_v18 = vrot.slane %v2470_v15, 2  ;;  %v682_v30 = vmul.f32 0.0625, %v668_v9  ;;  %v757_v36 = vmul.f32 %v2833_v37, %v746_v14 }
 0x285   :  { %v723_v53 = vrot.slane %v691_v61, %v2876_v34  ;;  %v719_v63 = vrot.slane %v690_v27, %v2876_v34 }
 0x286   :  { %v2472_v28 = vpop.eup %2471  ;;  %v820_v17 = vmul.f32 %v804_v18, %v2792_v59  ;;  %v765_v10 = vsub.f32 %v682_v30, %v757_v36 }
 0x287   :  { %v803_v21 = vrot.slane %v2472_v28, 2  ;;  %2272 = vmatmul.mubr.bf16.gmra.mxu0 %v894_v22  ;;  %v738_v26 = vsub.f32 %v2903_v5, %v723_v53  ;;  %v739_v9 = vsub.f32 %v2914_v24, %v723_v53  ;;  %v736_v3 = vsub.f32 %v2957_v13, %v719_v63 }
 0x288   :  { %v846_v11 = vrot.slane %v820_v17, %v2880_v38  ;;  %v773_v31 = vmax.f32 %v765_v10, 0.0  ;;  %v737_v39 = vsub.f32 %v2959_v4, %v719_v63 }
 0x289   :  { %v819_v6 = vmul.f32 %v803_v21, %v2792_v59 }
 0x28a   :  { %v866_v40 = vmul.f32 %v846_v11, %v735_v33  ;;  %v781_v7 = vadd.f32 1e-05, %v773_v31  ;;  %v865_v1 = vmul.f32 %v846_v11, %v734_v48 }
 0x28b   :  { %v842_v62 = vrot.slane %v819_v6, %v2880_v38 }
 0x28c   :  { %2475 = vrsqrt.f32 %v781_v7  ;;  %v885_v51 = vadd.f32 %v2888_v54, %v865_v1  ;;  %v886_v56 = vadd.f32 %v2888_v54, %v866_v40 }
 0x28d   :  { %v864_v12 = vmul.f32 %v842_v62, %v733_v58  ;;  %v863_v49 = vmul.f32 %v842_v62, %v732_v2 }
 0x28e   :  { %v2474_v25 = vpop.eup %2473  ;;  %v896_v50 = vpack.c.bf16 %v886_v56, %v885_v51 }
 0x28f   :  { %v883_v29 = vadd.f32 %v2888_v54, %v863_v49  ;;  %v884_v60 = vadd.f32 %v2888_v54, %v864_v12  ;;  %v806_v0 = vrot.slane %v2474_v25, 2 }
 0x291   :  { %v895_v8 = vpack.c.bf16 %v884_v60, %v883_v29  ;;  %v822_v52 = vmul.f32 %v806_v0, %v2792_v59  ;;  %v2445_v60 = vld [vmem:[#allocation10 + $0x38] sm:$0xff]   ;;  %v2446_v0 = vld [vmem:[#allocation10 + $0x30] sm:$0xff]  }
 0x292   :  { %2315 = vmatprep.subr.bf16.mxu0 %v2445_v60 }
 0x293   :  { %2275 = vmatprep.mubr.bf16.mxu0 %v895_v8  ;;  %v854_v23 = vrot.slane %v822_v52, %v2880_v38  ;;  %2316 = vmatpush3.bf16.msra.mxu0 %v2445_v60 }
 0x294   :  { %2276 = vmatmul.mubr.bf16.gmra.mxu0 %v896_v50  ;;  %2317 = vmatprep.subr.bf16.mxu0 %v2446_v0 }
 0x295   :  { %v870_v14 = vmul.f32 %v854_v23, %v739_v9  ;;  %v869_v15 = vmul.f32 %v854_v23, %v738_v26 }
 0x297   :  { %v889_v36 = vadd.f32 %v2888_v54, %v869_v15  ;;  %v890_v34 = vadd.f32 %v2888_v54, %v870_v14  ;;  %2318 = vmatpush3.bf16.msra.mxu0 %v2446_v0 }
 0x299   :  { %v2476_v55 = vpop.eup %2475  ;;  %v898_v28 = vpack.c.bf16 %v890_v34, %v889_v36 }
 0x29a   :  { %v805_v19 = vrot.slane %v2476_v55, 2 }
 0x29c   :  { %v821_v32 = vmul.f32 %v805_v19, %v2792_v59 }
 0x29e   :  { %v850_v20 = vrot.slane %v821_v32, %v2880_v38 }
 0x2a0   :  { %v868_v18 = vmul.f32 %v850_v20, %v737_v39  ;;  %v867_v30 = vmul.f32 %v850_v20, %v736_v3 }
 0x2a2   :  { %v887_v5 = vadd.f32 %v2888_v54, %v867_v30  ;;  %v888_v24 = vadd.f32 %v2888_v54, %v868_v18 }
 0x2a4   :  { %v897_v22 = vpack.c.bf16 %v888_v24, %v887_v5 }
 0x2a6   :  { %2279 = vmatprep.mubr.bf16.mxu0 %v897_v22 }
 0x2a7   :  { %2280 = vmatmul.mubr.bf16.gmra.mxu0 %v898_v28 }
 0x33f   :  { %v2269_v17 = vpop.f32.mrf.mxu0 }
 0x341   :  { %v997_v13 = vpop.f32.mrf.mxu0 }
 0x343   :  { %v2270_v10 = vpop.f32.mrf.mxu0 }
 0x344   :  { %v1061_v56 = vpack.c.bf16 %v2270_v10, %v2269_v17 }
 0x345   :  { %v1000_v4 = vpop.f32.mrf.mxu0 }
 0x346   :  { %v1060_v29 = vpack.c.bf16 %v1000_v4, %v997_v13 }
 0x347   :  { %v2273_v35 = vpop.f32.mrf.mxu0 }
 0x349   :  { %v1013_v21 = vpop.f32.mrf.mxu0 }
 0x34b   :  { %v2274_v48 = vpop.f32.mrf.mxu0 }
 0x34c   :  { %v1063_v25 = vpack.c.bf16 %v2274_v48, %v2273_v35 }
 0x34d   :  { %v1016_v33 = vpop.f32.mrf.mxu0 }
 0x34e   :  { %v1062_v51 = vpack.c.bf16 %v1016_v33, %v1013_v21 }
 0x354   :  { %v2277_v11 = vpop.f32.mrf.mxu0 }
 0x356   :  { %v1029_v31 = vpop.f32.mrf.mxu0 }
 0x358   :  { %v2278_v6 = vpop.f32.mrf.mxu0 }
 0x359   :  { %v1065_v12 = vpack.c.bf16 %v2278_v6, %v2277_v11 }
 0x35a   :  { %v1032_v40 = vpop.f32.mrf.mxu0 }
 0x35b   :  { %v1064_v49 = vpack.c.bf16 %v1032_v40, %v1029_v31 }
 0x367   :  { %v2281_v7 = vpop.f32.mrf.mxu0 }
 0x369   :  { %v1045_v1 = vpop.f32.mrf.mxu0 }
 0x36b   :  { %v2282_v2 = vpop.f32.mrf.mxu0 }
 0x36c   :  { %v1067_v54 = vpack.c.bf16 %v2282_v2, %v2281_v7 }
 0x36d   :  { %v1048_v58 = vpop.f32.mrf.mxu0 }
 0x36e   :  { %v1066_v62 = vpack.c.bf16 %v1048_v58, %v1045_v1  ;;  %2283 = vmatprep.subr.bf16.mxu1 %v1067_v54 }
 0x36f   :  { %2284 = vmatpush3.bf16.msra.mxu1 %v1067_v54 }
 0x370   :  { %2285 = vmatprep.subr.bf16.mxu1 %v1066_v62 }
 0x373   :  { %2286 = vmatpush3.bf16.msra.mxu1 %v1066_v62 }
 0x374   :  { %2287 = vmatprep.subr.bf16.mxu1 %v1065_v12 }
 0x377   :  { %2288 = vmatpush3.bf16.msra.mxu1 %v1065_v12 }
 0x378   :  { %2289 = vmatprep.subr.bf16.mxu1 %v1064_v49 }
 0x37b   :  { %2290 = vmatpush3.bf16.msra.mxu1 %v1064_v49 }
 0x37c   :  { %2291 = vmatprep.subr.bf16.mxu1 %v1063_v25 }
 0x37f   :  { %2292 = vmatpush3.bf16.msra.mxu1 %v1063_v25 }
 0x380   :  { %2293 = vmatprep.subr.bf16.mxu1 %v1062_v51 }
 0x383   :  { %2294 = vmatpush3.bf16.msra.mxu1 %v1062_v51 }
 0x384   :  { %2295 = vmatprep.subr.bf16.mxu1 %v1061_v56 }
 0x387   :  { %2296 = vmatpush3.bf16.msra.mxu1 %v1061_v56 }
 0x388   :  { %2297 = vmatprep.subr.bf16.mxu1 %v1060_v29 }
 0x38b   :  { %2298 = vmatpush3.bf16.msra.mxu1 %v1060_v29 }
 0x38e   :  { %2300 = vmatmul.mubr.bf16.vlgmr.msra.gmra.mxu1 %v2767_v41  ;;  %v2447_v41 = vld [vmem:[#allocation10 + $0x28] sm:$0xff]  }
 0x38f   :  { %2303 = vmatprep.mubr.bf16.mxu1 %v2769_v42  ;;  %2319 = vmatprep.subr.bf16.mxu0 %v2447_v41  ;;  %v2448_v42 = vld [vmem:[#allocation10 + $0x20] sm:$0xff]  }
 0x390   :  { %2320 = vmatpush3.bf16.msra.mxu0 %v2447_v41 }
 0x391   :  { %2321 = vmatprep.subr.bf16.mxu0 %v2448_v42 }
 0x394   :  { %2322 = vmatpush3.bf16.msra.mxu0 %v2448_v42 }
 0x396   :  { %2304 = vmatmul.mubr.bf16.gmra.mxu1 %v2773_v43  ;;  %v2449_v43 = vld [vmem:[#allocation10 + $0x18] sm:$0xff]  }
 0x397   :  { %2307 = vmatprep.mubr.bf16.mxu1 %v2775_v44  ;;  %2323 = vmatprep.subr.bf16.mxu0 %v2449_v43  ;;  %v2450_v44 = vld [vmem:[#allocation10 + $0x10] sm:$0xff]  }
 0x398   :  { %2324 = vmatpush3.bf16.msra.mxu0 %v2449_v43 }
 0x399   :  { %2325 = vmatprep.subr.bf16.mxu0 %v2450_v44 }
 0x39c   :  { %2326 = vmatpush3.bf16.msra.mxu0 %v2450_v44 }
 0x39e   :  { %2308 = vmatmul.mubr.bf16.gmra.mxu1 %v2779_v45  ;;  %v2451_v45 = vld [vmem:[#allocation10 + $0x8] sm:$0xff]  }
 0x39f   :  { %2311 = vmatprep.mubr.bf16.mxu1 %v2781_v46  ;;  %2327 = vmatprep.subr.bf16.mxu0 %v2451_v45  ;;  %v1070_v46 = vsub.s32 4, %v2789_v57 }
 0x3a0   :  { %2328 = vmatpush3.bf16.msra.mxu0 %v2451_v45 }
 0x3a6   :  { %2312 = vmatmul.mubr.bf16.gmra.mxu1 %v2785_v47  ;;  %v3044_v47 = vrot.slane %v2792_v59, %v1070_v46 }
 0x3a7   :  { %2363 = vmatprep.mubr.bf16.mxu1 %v2764_v16  ;;  %v2452_v16 = vld [vmem:[#allocation10] sm:$0xff]  }
 0x3a8   :  { %2329 = vmatprep.subr.bf16.mxu0 %v2452_v16 }
 0x3a9   :  { %2330 = vmatpush3.bf16.msra.mxu0 %v2452_v16 }
 0x44e   :  { %v2301_v8 = vpop.f32.mrf.mxu1 }
 0x44f   :  { %v1115_v50 = vadd.f32 %v2301_v8, %v3044_v47 }
 0x450   :  { %v1106_v61 = vpop.f32.mrf.mxu1 }
 0x451   :  { %v1107_v52 = vadd.f32 %v1106_v61, %v3044_v47  ;;  %v3048_v27 = vmax.f32 %v1115_v50, 0.0 }
 0x452   :  { %v2302_v53 = vpop.f32.mrf.mxu1 }
 0x453   :  { %v1118_v55 = vadd.f32 %v2302_v53, %v3044_v47  ;;  %v3051_v23 = vmax.f32 %v1107_v52, 0.0  ;;  %v1251_v59 = vmul.f32 %v3048_v27, %v3048_v27 }
 0x454   :  { %v1109_v63 = vpop.f32.mrf.mxu1 }
 0x455   :  { %v3053_v19 = vmax.f32 %v1118_v55, 0.0  ;;  %v1110_v26 = vadd.f32 %v1109_v63, %v3044_v47  ;;  %v1249_v39 = vmul.f32 %v3051_v23, %v3051_v23 }
 0x456   :  { %v2305_v9 = vpop.f32.mrf.mxu1 }
 0x457   :  { %v1192_v32 = vadd.f32 %v3053_v19, %v3048_v27  ;;  %v1252_v14 = vmul.f32 %v3053_v19, %v3053_v19  ;;  %v3062_v15 = vmax.f32 %v1110_v26, 0.0  ;;  %v1131_v3 = vadd.f32 %v2305_v9, %v3044_v47 }
 0x458   :  { %v1122_v20 = vpop.f32.mrf.mxu1 }
 0x459   :  { %v1193_v18 = vrot.slane %v1192_v32, 4  ;;  %v1272_v30 = vadd.f32 %v1252_v14, %v1251_v59  ;;  %v1185_v36 = vadd.f32 %v3062_v15, %v3051_v23  ;;  %v1250_v34 = vmul.f32 %v3062_v15, %v3062_v15 }
 0x45a   :  { %v3071_v5 = vmax.f32 %v1131_v3, 0.0  ;;  %v1123_v24 = vadd.f32 %v1122_v20, %v3044_v47  ;;  %v2306_v22 = vpop.f32.mrf.mxu1 }
 0x45b   :  { %v1194_v28 = vadd.f32 %v1193_v18, %v1192_v32  ;;  %v1273_v17 = vrot.slane %v1272_v30, 4  ;;  %v1186_v13 = vrot.slane %v1185_v36, 4  ;;  %v1265_v10 = vadd.f32 %v1250_v34, %v1249_v39 }
 0x45c   :  { %v3074_v4 = vmax.f32 %v1123_v24, 0.0  ;;  %v1134_v35 = vadd.f32 %v2306_v22, %v3044_v47  ;;  %v1125_v21 = vpop.f32.mrf.mxu1  ;;  %v1255_v6 = vmul.f32 %v3071_v5, %v3071_v5 }
 0x45d   :  { %v1195_v48 = vrot.slane %v1194_v28, 2  ;;  %v1274_v33 = vadd.f32 %v1273_v17, %v1272_v30  ;;  %v1187_v11 = vadd.f32 %v1186_v13, %v1185_v36  ;;  %v1266_v31 = vrot.slane %v1265_v10, 4 }
 0x45e   :  { %v3079_v40 = vmax.f32 %v1134_v35, 0.0  ;;  %v1126_v7 = vadd.f32 %v1125_v21, %v3044_v47  ;;  %v2309_v1 = vpop.f32.mrf.mxu1  ;;  %v1253_v12 = vmul.f32 %v3074_v4, %v3074_v4 }
 0x45f   :  { %v1196_v2 = vadd.f32 %v1195_v48, %v1194_v28  ;;  %v1275_v54 = vrot.slane %v1274_v33, 2  ;;  %v1188_v58 = vrot.slane %v1187_v11, 2  ;;  %v1267_v62 = vadd.f32 %v1266_v31, %v1265_v10 }
 0x460   :  { %v1206_v49 = vadd.f32 %v3079_v40, %v3071_v5  ;;  %v1256_v25 = vmul.f32 %v3079_v40, %v3079_v40  ;;  %v3088_v51 = vmax.f32 %v1126_v7, 0.0  ;;  %v1138_v45 = vpop.f32.mrf.mxu1 }
 0x461   :  { %v1197_v56 = vrot.slane %v1196_v2, 1  ;;  %v1276_v29 = vadd.f32 %v1275_v54, %v1274_v33  ;;  %v1189_v60 = vadd.f32 %v1188_v58, %v1187_v11  ;;  %v1268_v0 = vrot.slane %v1267_v62, 2 }
 0x462   :  { %v1207_v41 = vrot.slane %v1206_v49, 4  ;;  %v1286_v42 = vadd.f32 %v1256_v25, %v1255_v6  ;;  %v1199_v43 = vadd.f32 %v3088_v51, %v3074_v4  ;;  %v1254_v44 = vmul.f32 %v3088_v51, %v3088_v51  ;;  %v2310_v39 = vpop.f32.mrf.mxu1 }
 0x463   :  { %v1198_v16 = vadd.f32 %v1197_v56, %v1196_v2  ;;  %v1277_v46 = vrot.slane %v1276_v29, 1  ;;  %v1190_v8 = vrot.slane %v1189_v60, 1  ;;  %v1269_v50 = vadd.f32 %v1268_v0, %v1267_v62 }
 0x464   :  { %v1208_v61 = vadd.f32 %v1207_v41, %v1206_v49  ;;  %v1287_v52 = vrot.slane %v1286_v42, 4  ;;  %v1200_v53 = vrot.slane %v1199_v43, 4  ;;  %v1279_v55 = vadd.f32 %v1254_v44, %v1253_v12  ;;  %v1141_v48 = vpop.f32.mrf.mxu1 }
 0x465   :  { %v1242_v63 = vmul.f32 0.0625, %v1198_v16  ;;  %v1278_v26 = vadd.f32 %v1277_v46, %v1276_v29  ;;  %v1191_v59 = vadd.f32 %v1190_v8, %v1189_v60  ;;  %v1270_v9 = vrot.slane %v1269_v50, 1 }
 0x466   :  { %v1209_v32 = vrot.slane %v1208_v61, 2  ;;  %v1288_v14 = vadd.f32 %v1287_v52, %v1286_v42  ;;  %v1201_v3 = vadd.f32 %v1200_v53, %v1199_v43  ;;  %v1280_v13 = vrot.slane %v1279_v55, 4  ;;  %v2313_v29 = vpop.f32.mrf.mxu1 }
 0x467   :  { %v1386_v20 = vmul.f32 %v1242_v63, %v1242_v63  ;;  %v3094_v18 = vmul.f32 0.0625, %v1191_v59  ;;  %v1271_v30 = vadd.f32 %v1270_v9, %v1269_v50  ;;  %v1322_v22 = vmul.f32 0.0625, %v1278_v26 }
 0x468   :  { %v1210_v36 = vadd.f32 %v1209_v32, %v1208_v61  ;;  %v1289_v34 = vrot.slane %v1288_v14, 2  ;;  %v1202_v24 = vrot.slane %v1201_v3, 2  ;;  %v1281_v58 = vadd.f32 %v1280_v13, %v1279_v55  ;;  %v3111_v61 = vpop.f32.mrf.mxu1  ;;  %v3120_v32 = vld [vmem:[#allocation13] sm:$0xff] }
 0x469   :  { %v1394_v28 = vmul.f32 %v1386_v20, %v2833_v37  ;;  %v1385_v17 = vmul.f32 %v3094_v18, %v3094_v18  ;;  %v1321_v11 = vmul.f32 0.0625, %v1271_v30  ;;  %v1147_v62 = vadd.f32 %v2309_v1, %v3044_v47 }
 0x46a   :  { %v1211_v10 = vrot.slane %v1210_v36, 1  ;;  %v1290_v35 = vadd.f32 %v1289_v34, %v1288_v14  ;;  %v1203_v21 = vadd.f32 %v1202_v24, %v1201_v3  ;;  %v1282_v0 = vrot.slane %v1281_v58, 2  ;;  %v2314_v24 = vpop.f32.mrf.mxu1 }
 0x46b   :  { %v1402_v33 = vsub.f32 %v1322_v22, %v1394_v28  ;;  %v1393_v31 = vmul.f32 %v1385_v17, %v2833_v37  ;;  %v1515_v43 = vsub.s32 6, %v2789_v57  ;;  %v3109_v50 = vmax.f32 %v1147_v62, 0.0 }
 0x46c   :  { %v1212_v6 = vadd.f32 %v1211_v10, %v1210_v36  ;;  %v1291_v7 = vrot.slane %v1290_v35, 1  ;;  %v1204_v2 = vrot.slane %v1203_v21, 1  ;;  %v1283_v16 = vadd.f32 %v1282_v0, %v1281_v58 }
 0x46d   :  { %v1410_v54 = vmax.f32 %v1402_v33, 0.0  ;;  %v1401_v12 = vsub.f32 %v1321_v11, %v1393_v31  ;;  %v1139_v55 = vadd.f32 %v1138_v45, %v3044_v47  ;;  %v1150_v26 = vadd.f32 %v2310_v39, %v3044_v47 }
 0x46e   :  { %v3101_v49 = vmul.f32 0.0625, %v1212_v6  ;;  %v1292_v25 = vadd.f32 %v1291_v7, %v1290_v35  ;;  %v1205_v56 = vadd.f32 %v1204_v2, %v1203_v21  ;;  %v1284_v52 = vrot.slane %v1283_v16, 1 }
 0x46f   :  { %v1418_v60 = vadd.f32 1e-05, %v1410_v54  ;;  %v1409_v41 = vmax.f32 %v1401_v12, 0.0  ;;  %v3118_v59 = vsub.s32 7, %v2789_v57  ;;  %v1330_v14 = vmul.f32 %v3120_v32, %v1242_v63 }
 0x470   :  { %v1388_v42 = vmul.f32 %v3101_v49, %v3101_v49  ;;  %v3106_v44 = vmul.f32 0.0625, %v1205_v56  ;;  %v1324_v1 = vmul.f32 0.0625, %v1292_v25  ;;  %v3124_v3 = vsub.s32 5, %v2789_v57 }
 0x471   :  { %2477 = vrsqrt.f32 %v1418_v60  ;;  %v1417_v46 = vadd.f32 1e-05, %v1409_v41  ;;  %v1285_v20 = vadd.f32 %v1284_v52, %v1283_v16  ;;  %v3127_v34 = vmax.f32 %v1150_v26, 0.0 }
 0x472   :  { %v1396_v8 = vmul.f32 %v1388_v42, %v2833_v37  ;;  %v1387_v53 = vmul.f32 %v3106_v44, %v3106_v44  ;;  %v1142_v45 = vadd.f32 %v1141_v48, %v3044_v47  ;;  %v1163_v39 = vadd.f32 %v2313_v29, %v3044_v47 }
 0x473   :  { %2479 = vrsqrt.f32 %v1417_v46  ;;  %v3132_v22 = vrot.slane %v3120_v32, %v1515_v43  ;;  %v1323_v28 = vmul.f32 0.0625, %v1285_v20  ;;  %v1259_v63 = vmul.f32 %v3109_v50, %v3109_v50 }
 0x474   :  { %v1404_v9 = vsub.f32 %v1324_v1, %v1396_v8  ;;  %v1395_v30 = vmul.f32 %v1387_v53, %v2833_v37  ;;  %v3136_v17 = vmax.f32 %v1139_v55, 0.0  ;;  %v1220_v10 = vadd.f32 %v3127_v34, %v3109_v50 }
 0x475   :  { %v1260_v35 = vmul.f32 %v3127_v34, %v3127_v34  ;;  %v3142_v21 = vmax.f32 %v1142_v45, 0.0  ;;  %v3145_v48 = vrot.slane %v1330_v14, %v3118_v59  ;;  %v3147_v11 = vmax.f32 %v1163_v39, 0.0 }
 0x476   :  { %v1412_v36 = vmax.f32 %v1404_v9, 0.0  ;;  %v1403_v33 = vsub.f32 %v1323_v28, %v1395_v30  ;;  %v1166_v31 = vadd.f32 %v2314_v24, %v3044_v47  ;;  %v1329_v6 = vmul.f32 %v3120_v32, %v3094_v18 }
 0x477   :  { %v1221_v7 = vrot.slane %v1220_v10, 4  ;;  %v1300_v2 = vadd.f32 %v1260_v35, %v1259_v63  ;;  %v1213_v54 = vadd.f32 %v3142_v21, %v3136_v17  ;;  %v1257_v62 = vmul.f32 %v3136_v17, %v3136_v17 }
 0x478   :  { %v1420_v13 = vadd.f32 1e-05, %v1412_v36  ;;  %v1411_v58 = vmax.f32 %v1403_v33, 0.0  ;;  %v1258_v12 = vmul.f32 %v3142_v21, %v3142_v21  ;;  %v3158_v60 = vmax.f32 %v1166_v31, 0.0 }
 0x479   :  { %v1222_v25 = vadd.f32 %v1221_v7, %v1220_v10  ;;  %v1301_v56 = vrot.slane %v1300_v2, 4  ;;  %v1214_v29 = vrot.slane %v1213_v54, 4  ;;  %v1371_v18 = vsub.f32 %v3048_v27, %v3145_v48 }
 0x47a   :  { %2481 = vrsqrt.f32 %v1420_v13  ;;  %v1419_v0 = vadd.f32 1e-05, %v1411_v58  ;;  %v1293_v41 = vadd.f32 %v1258_v12, %v1257_v62  ;;  %v1263_v42 = vmul.f32 %v3147_v11, %v3147_v11 }
 0x47b   :  { %v1223_v16 = vrot.slane %v1222_v25, 2  ;;  %v1302_v46 = vadd.f32 %v1301_v56, %v1300_v2  ;;  %v1215_v1 = vadd.f32 %v1214_v29, %v1213_v54  ;;  %v1234_v8 = vadd.f32 %v3158_v60, %v3147_v11  ;;  %v1157_v2 = vpop.f32.mrf.mxu1 }
 0x47c   :  { %2483 = vrsqrt.f32 %v1419_v0  ;;  %v1294_v53 = vrot.slane %v1293_v41, 4  ;;  %v1264_v55 = vmul.f32 %v3158_v60, %v3158_v60  ;;  %v1372_v36 = vsub.f32 %v3053_v19, %v3145_v48 }
 0x47d   :  { %v1224_v26 = vadd.f32 %v1223_v16, %v1222_v25  ;;  %v1303_v9 = vrot.slane %v1302_v46, 2  ;;  %v1216_v14 = vrot.slane %v1215_v1, 2  ;;  %v1235_v20 = vrot.slane %v1234_v8, 4 }
 0x47e   :  { %v2478_v43 = vpop.eup %2477  ;;  %v3171_v45 = vrot.slane %v1329_v6, %v3118_v59  ;;  %v1331_v39 = vmul.f32 %v3120_v32, %v3106_v44  ;;  %v1295_v24 = vadd.f32 %v1294_v53, %v1293_v41  ;;  %v1314_v10 = vadd.f32 %v1264_v55, %v1263_v42 }
 0x47f   :  { %v1442_v52 = vrot.slane %v2478_v43, 2  ;;  %v1225_v28 = vrot.slane %v1224_v26, 1  ;;  %v1304_v63 = vadd.f32 %v1303_v9, %v1302_v46  ;;  %v1217_v13 = vadd.f32 %v1216_v14, %v1215_v1 }
 0x480   :  { %v2480_v30 = vpop.eup %2479  ;;  %v1332_v33 = vmul.f32 %v3120_v32, %v3101_v49  ;;  %v1296_v31 = vrot.slane %v1295_v24, 2  ;;  %v1236_v7 = vadd.f32 %v1235_v20, %v1234_v8  ;;  %v3179_v62 = vrot.slane %v1331_v39, %v3118_v59 }
 0x481   :  { %v1441_v35 = vrot.slane %v2480_v30, 2  ;;  %v1458_v19 = vmul.f32 %v3120_v32, %v1442_v52  ;;  %v1226_v54 = vadd.f32 %v1225_v28, %v1224_v26  ;;  %v1305_v6 = vrot.slane %v1304_v63, 1 }
 0x482   :  { %v1218_v58 = vrot.slane %v1217_v13, 1  ;;  %v1297_v44 = vadd.f32 %v1296_v31, %v1295_v24  ;;  %v1155_v12 = vadd.f32 %v3111_v61, %v3044_v47  ;;  %v1237_v25 = vrot.slane %v1236_v7, 2 }
 0x483   :  { %v3183_v56 = vmul.f32 0.0625, %v1226_v54  ;;  %v1315_v49 = vrot.slane %v1314_v10, 4  ;;  %v1158_v0 = vadd.f32 %v1157_v2, %v3044_v47  ;;  %v1457_v41 = vmul.f32 %v3120_v32, %v1441_v35 }
 0x484   :  { %v1219_v29 = vadd.f32 %v1218_v58, %v1217_v13  ;;  %v1306_v42 = vadd.f32 %v1305_v6, %v1304_v63  ;;  %v1298_v43 = vrot.slane %v1297_v44, 1  ;;  %v1238_v16 = vadd.f32 %v1237_v25, %v1236_v7 }
 0x485   :  { %v1472_v1 = vrot.slane %v1458_v19, %v3124_v3  ;;  %v1369_v8 = vsub.f32 %v3051_v23, %v3171_v45  ;;  %v1370_v61 = vsub.f32 %v3062_v15, %v3171_v45  ;;  %v3193_v52 = vrot.slane %v1332_v33, %v3118_v59 }
 0x486   :  { %v1373_v47 = vsub.f32 %v3074_v4, %v3179_v62  ;;  %v1390_v53 = vmul.f32 %v3183_v56, %v3183_v56  ;;  %v3199_v55 = vmul.f32 0.0625, %v1219_v29  ;;  %v3201_v26 = vmax.f32 %v1155_v12, 0.0 }
 0x487   :  { %v2482_v46 = vpop.eup %2481  ;;  %v1299_v9 = vadd.f32 %v1298_v43, %v1297_v44  ;;  %v1239_v14 = vrot.slane %v1238_v16, 1  ;;  %v1316_v20 = vadd.f32 %v1315_v49, %v1314_v10  ;;  %v3203_v23 = vmax.f32 %v1158_v0, 0.0 }
 0x488   :  { %v1468_v15 = vrot.slane %v1457_v41, %v3124_v3  ;;  %v1326_v30 = vmul.f32 0.0625, %v1306_v42  ;;  %v1398_v45 = vmul.f32 %v1390_v53, %v2833_v37  ;;  %v1389_v4 = vmul.f32 %v3199_v55, %v3199_v55 }
 0x489   :  { %v2484_v39 = vpop.eup %2483  ;;  %v1499_v24 = vmul.f32 %v1472_v1, %v1371_v18  ;;  %v1444_v28 = vrot.slane %v2482_v46, 2  ;;  %v1374_v63 = vsub.f32 %v3088_v51, %v3179_v62  ;;  %v1240_v13 = vadd.f32 %v1239_v14, %v1238_v16 }
 0x48a   :  { %v1500_v10 = vmul.f32 %v1472_v1, %v1372_v36  ;;  %v1443_v35 = vrot.slane %v2484_v39, 2  ;;  %v1406_v33 = vsub.f32 %v1326_v30, %v1398_v45  ;;  %v1397_v31 = vmul.f32 %v1389_v4, %v2833_v37 }
 0x48b   :  { %v1325_v7 = vmul.f32 0.0625, %v1299_v9  ;;  %v3215_v2 = vmul.f32 0.0625, %v1240_v13  ;;  %v1317_v19 = vrot.slane %v1316_v20, 2  ;;  %v1227_v54 = vadd.f32 %v3203_v23, %v3201_v26 }
 0x48c   :  { %v1498_v6 = vmul.f32 %v1468_v15, %v1370_v61  ;;  %v1459_v27 = vmul.f32 %v3120_v32, %v1443_v35  ;;  %v1414_v48 = vmax.f32 %v1406_v33, 0.0  ;;  %v1261_v51 = vmul.f32 %v3201_v26, %v3201_v26 }
 0x48d   :  { %v1460_v18 = vmul.f32 %v3120_v32, %v1444_v28  ;;  %v1405_v36 = vsub.f32 %v1325_v7, %v1397_v31  ;;  %v1318_v58 = vadd.f32 %v1317_v19, %v1316_v20  ;;  %v1392_v62 = vmul.f32 %v3215_v2, %v3215_v2 }
 0x48e   :  { %v1476_v44 = vrot.slane %v1459_v27, %v3124_v3  ;;  %v1422_v12 = vadd.f32 1e-05, %v1414_v48  ;;  %v1228_v25 = vrot.slane %v1227_v54, 4  ;;  %v1262_v29 = vmul.f32 %v3203_v23, %v3203_v23 }
 0x48f   :  { %v1519_v49 = vadd.f32 %v3132_v22, %v1499_v24  ;;  %v1520_v0 = vadd.f32 %v3132_v22, %v1500_v10  ;;  %v1413_v41 = vmax.f32 %v1405_v36, 0.0  ;;  %v1319_v42 = vrot.slane %v1318_v58, 1 }
 0x490   :  { %v1502_v43 = vmul.f32 %v1476_v44, %v1374_v63  ;;  %2485 = vrsqrt.f32 %v1422_v12  ;;  %v1229_v16 = vadd.f32 %v1228_v25, %v1227_v54  ;;  %v1307_v46 = vadd.f32 %v1262_v29, %v1261_v51 }
 0x491   :  { %v1480_v1 = vrot.slane %v1460_v18, %v3124_v3  ;;  %v1421_v61 = vadd.f32 1e-05, %v1413_v41  ;;  %v1320_v53 = vadd.f32 %v1319_v42, %v1318_v58  ;;  %v1400_v9 = vmul.f32 %v1392_v62, %v2833_v37 }
 0x492   :  { %v1230_v14 = vrot.slane %v1229_v16, 2  ;;  %v1308_v20 = vrot.slane %v1307_v46, 4  ;;  %v1497_v30 = vmul.f32 %v1468_v15, %v1369_v8  ;;  %v1518_v45 = vadd.f32 %v3132_v22, %v1498_v6 }
 0x493   :  { %2487 = vrsqrt.f32 %v1421_v61  ;;  %v1328_v4 = vmul.f32 0.0625, %v1320_v53  ;;  %v1501_v39 = vmul.f32 %v1476_v44, %v1373_v47  ;;  %v1522_v24 = vadd.f32 %v3132_v22, %v1502_v43 }
 0x494   :  { %v1231_v28 = vadd.f32 %v1230_v14, %v1229_v16  ;;  %v1309_v63 = vadd.f32 %v1308_v20, %v1307_v46  ;;  %v1517_v13 = vadd.f32 %v3132_v22, %v1497_v30  ;;  %v1375_v10 = vsub.f32 %v3071_v5, %v3193_v52 }
 0x495   :  { %v1376_v35 = vsub.f32 %v3079_v40, %v3193_v52  ;;  %v1408_v33 = vsub.f32 %v1328_v4, %v1400_v9  ;;  %v1521_v8 = vadd.f32 %v3132_v22, %v1501_v39  ;;  %v1534_v15 = vpack.c.bf16 %v1520_v0, %v1519_v49 }
 0x496   :  { %v1232_v31 = vrot.slane %v1231_v28, 1  ;;  %v1310_v7 = vrot.slane %v1309_v63, 2  ;;  %v1533_v19 = vpack.c.bf16 %v1518_v45, %v1517_v13  ;;  %v1503_v27 = vmul.f32 %v1480_v1, %v1375_v10 }
 0x497   :  { %v1504_v47 = vmul.f32 %v1480_v1, %v1376_v35  ;;  %v1416_v54 = vmax.f32 %v1408_v33, 0.0  ;;  %v1535_v6 = vpack.c.bf16 %v1522_v24, %v1521_v8  ;;  %v1334_v5 = vmul.f32 %v3120_v32, %v3183_v56 }
 0x498   :  { %v1233_v48 = vadd.f32 %v1232_v31, %v1231_v28  ;;  %v1311_v51 = vadd.f32 %v1310_v7, %v1309_v63  ;;  %2331 = vmatprep.mubr.bf16.mxu0 %v1533_v19  ;;  %v1523_v36 = vadd.f32 %v3132_v22, %v1503_v27  ;;  %v1333_v25 = vmul.f32 %v3120_v32, %v3199_v55 }
 0x499   :  { %v1424_v18 = vadd.f32 1e-05, %v1416_v54  ;;  %2332 = vmatmul.mubr.bf16.vlgmr.msra.gmra.mxu0 %v1534_v15  ;;  %v1524_v58 = vadd.f32 %v3132_v22, %v1504_v47  ;;  %v1360_v29 = vrot.slane %v1334_v5, %v3118_v59 }
 0x49a   :  { %v1247_v40 = vmul.f32 0.0625, %v1233_v48  ;;  %v1312_v52 = vrot.slane %v1311_v51, 1  ;;  %2335 = vmatprep.mubr.bf16.mxu0 %v1535_v6  ;;  %v1356_v46 = vrot.slane %v1333_v25, %v3118_v59 }
 0x49b   :  { %2489 = vrsqrt.f32 %v1424_v18  ;;  %v1536_v41 = vpack.c.bf16 %v1524_v58, %v1523_v36  ;;  %v1379_v61 = vsub.f32 %v3109_v50, %v1360_v29  ;;  %v1380_v53 = vsub.f32 %v3127_v34, %v1360_v29 }
 0x49c   :  { %v1313_v62 = vadd.f32 %v1312_v52, %v1311_v51  ;;  %v1391_v44 = vmul.f32 %v1247_v40, %v1247_v40  ;;  %v1377_v45 = vsub.f32 %v3136_v17, %v1356_v46  ;;  %v1378_v4 = vsub.f32 %v3142_v21, %v1356_v46 }
 0x49d   :  { %v2486_v12 = vpop.eup %2485  ;;  %v1336_v17 = vmul.f32 %v3120_v32, %v3215_v2  ;;  %v1335_v15 = vmul.f32 %v3120_v32, %v1247_v40 }
 0x49e   :  { %v1446_v49 = vrot.slane %v2486_v12, 2  ;;  %v1327_v0 = vmul.f32 0.0625, %v1313_v62  ;;  %v1399_v56 = vmul.f32 %v1391_v44, %v2833_v37 }
 0x49f   :  { %v1368_v31 = vrot.slane %v1336_v17, %v3118_v59  ;;  %v1364_v47 = vrot.slane %v1335_v15, %v3118_v59  ;;  %v2459_v17 = vld [vmem:[#allocation11 + $0x8] sm:$0xff]  }
 0x4a0   :  { %v2488_v42 = vpop.eup %2487  ;;  %v1462_v43 = vmul.f32 %v3120_v32, %v1446_v49  ;;  %v1407_v16 = vsub.f32 %v1327_v0, %v1399_v56  ;;  %v3278_v15 = vld [vmem:[#allocation13 + $0x8] sm:$0xff] }
 0x4a1   :  { %v1445_v1 = vrot.slane %v2488_v42, 2  ;;  %2336 = vmatmul.mubr.bf16.gmra.mxu0 %v1536_v41  ;;  %v1383_v6 = vsub.f32 %v3147_v11, %v1368_v31  ;;  %v1384_v27 = vsub.f32 %v3158_v60, %v1368_v31  ;;  %v1381_v18 = vsub.f32 %v3201_v26, %v1364_v47 }
 0x4a2   :  { %v1488_v55 = vrot.slane %v1462_v43, %v3124_v3  ;;  %v1415_v9 = vmax.f32 %v1407_v16, 0.0  ;;  %v1382_v5 = vsub.f32 %v3203_v23, %v1364_v47 }
 0x4a3   :  { %v1461_v14 = vmul.f32 %v3120_v32, %v1445_v1 }
 0x4a4   :  { %v1508_v20 = vmul.f32 %v1488_v55, %v1380_v53  ;;  %v1423_v37 = vadd.f32 1e-05, %v1415_v9  ;;  %v1507_v30 = vmul.f32 %v1488_v55, %v1379_v61 }
 0x4a5   :  { %v1484_v39 = vrot.slane %v1461_v14, %v3124_v3 }
 0x4a6   :  { %2491 = vrsqrt.f32 %v1423_v37  ;;  %v1527_v34 = vadd.f32 %v3132_v22, %v1507_v30  ;;  %v1528_v63 = vadd.f32 %v3132_v22, %v1508_v20  ;;  %v2494_v30 = vld [vmem:[#allocation2 + $0x8] sm:$0xff]  }
 0x4a7   :  { %v1506_v24 = vmul.f32 %v1484_v39, %v1378_v4  ;;  %v1505_v28 = vmul.f32 %v1484_v39, %v1377_v45  ;;  %v2495_v45 = vld [vmem:[#allocation2 + $0x10] sm:$0xff]   ;;  %v2496_v4 = vld [vmem:[#allocation2 + $0x18] sm:$0xff]   ;;  %v2497_v39 = vld [vmem:[#allocation2 + $0x20] sm:$0xff]  }
 0x4a8   :  { %v2490_v50 = vpop.eup %2489  ;;  %v1538_v8 = vpack.c.bf16 %v1528_v63, %v1527_v34  ;;  %v2453_v34 = vld [vmem:[#allocation11 + $0x38] sm:$0xff]   ;;  %v2682_v63 = vmov 0.0  }
 0x4a9   :  { %v1525_v13 = vadd.f32 %v3132_v22, %v1505_v28  ;;  %v1526_v10 = vadd.f32 %v3132_v22, %v1506_v24  ;;  %v1448_v35 = vrot.slane %v2490_v50, 2  ;;  %v2498_v24 = vld [vmem:[#allocation2 + $0x28] sm:$0xff]   ;;  %v2499_v28 = vld [vmem:[#allocation2 + $0x30] sm:$0xff]   ;;  %v2500_v50 = vld [vmem:[#allocation2 + $0x38] sm:$0xff]   ;;  %2379 = vmatprep.subr.bf16.mxu0 %v2682_v63 }
 0x4aa   :  { %2380 = vmatpush3.bf16.msra.mxu0 %v2453_v34 }
 0x4ab   :  { %v1537_v33 = vpack.c.bf16 %v1526_v10, %v1525_v13  ;;  %v1464_v21 = vmul.f32 %v3120_v32, %v1448_v35  ;;  %2381 = vmatprep.subr.bf16.mxu0 %v2682_v63  ;;  %v2454_v13 = vld [vmem:[#allocation11 + $0x30] sm:$0xff]   ;;  %v2455_v10 = vld [vmem:[#allocation11 + $0x28] sm:$0xff]   ;;  %v2456_v35 = vld [vmem:[#allocation11 + $0x20] sm:$0xff]  }
 0x4ad   :  { %2339 = vmatprep.mubr.bf16.mxu0 %v1537_v33  ;;  %v1496_v19 = vrot.slane %v1464_v21, %v3124_v3  ;;  %v2457_v33 = vld [vmem:[#allocation11 + $0x18] sm:$0xff]   ;;  %v2460_v21 = vld [vmem:[#allocation11] sm:$0xff]  }
 0x4ae   :  { %2340 = vmatmul.mubr.bf16.gmra.mxu0 %v1538_v8  ;;  %v2458_v8 = vld [vmem:[#allocation11 + $0x10] sm:$0xff]  }
 0x4af   :  { %v1512_v48 = vmul.f32 %v1496_v19, %v1384_v27  ;;  %v1511_v51 = vmul.f32 %v1496_v19, %v1383_v6  ;;  %2382 = vmatpush3.bf16.msra.mxu0 %v2454_v13 }
 0x4b0   :  { %2383 = vmatprep.subr.bf16.mxu0 %v2682_v63 }
 0x4b1   :  { %v1531_v58 = vadd.f32 %v3132_v22, %v1511_v51  ;;  %v1532_v59 = vadd.f32 %v3132_v22, %v1512_v48 }
 0x4b3   :  { %v2492_v7 = vpop.eup %2491  ;;  %2384 = vmatpush3.bf16.msra.mxu0 %v2455_v10 }
 0x4b4   :  { %v1447_v54 = vrot.slane %v2492_v7, 2  ;;  %2385 = vmatprep.subr.bf16.mxu0 %v2682_v63  ;;  %v3315_v7 = vsub.s32 0, %v2789_v57 }
 0x4b6   :  { %v1463_v2 = vmul.f32 %v3120_v32, %v1447_v54  ;;  %v1540_v32 = vpack.c.bf16 %v1532_v59, %v1531_v58  ;;  %v3283_v19 = vrot.slane %v3278_v15, %v3315_v7 }
 0x4b7   :  { %2386 = vmatpush3.bf16.msra.mxu0 %v2456_v35 }
 0x4b8   :  { %v1492_v40 = vrot.slane %v1463_v2, %v3124_v3  ;;  %2387 = vmatprep.subr.bf16.mxu0 %v2682_v63 }
 0x4ba   :  { %v1510_v52 = vmul.f32 %v1492_v40, %v1382_v5  ;;  %v1509_v36 = vmul.f32 %v1492_v40, %v1381_v18 }
 0x4bb   :  { %2388 = vmatpush3.bf16.msra.mxu0 %v2457_v33 }
 0x4bc   :  { %v1529_v11 = vadd.f32 %v3132_v22, %v1509_v36  ;;  %v1530_v60 = vadd.f32 %v3132_v22, %v1510_v52  ;;  %2389 = vmatprep.subr.bf16.mxu0 %v2682_v63 }
 0x4be   :  { %v1539_v62 = vpack.c.bf16 %v1530_v60, %v1529_v11 }
 0x4bf   :  { %2390 = vmatpush3.bf16.msra.mxu0 %v2458_v8 }
 0x4c0   :  { %2343 = vmatprep.mubr.bf16.mxu0 %v1539_v62  ;;  %2391 = vmatprep.subr.bf16.mxu0 %v2682_v63 }
 0x4c1   :  { %2344 = vmatmul.mubr.bf16.gmra.mxu0 %v1540_v32 }
 0x4c2   :  { %2395 = vmatprep.mubr.msk.bf16.mxu0 %vm2683_vm0, %v2682_v63 }
 0x4c3   :  { %2392 = vmatpush3.bf16.msra.mxu0 %v2459_v17 }
 0x4c4   :  { %2393 = vmatprep.subr.bf16.mxu0 %v2682_v63 }
 0x4c7   :  { %2394 = vmatpush3.bf16.msra.mxu0 %v2460_v21 }
 0x559   :  { %v2333_v44 = vpop.f32.mrf.mxu0 }
 0x55b   :  { %v1639_v26 = vpop.f32.mrf.mxu0 }
 0x55d   :  { %v2334_v12 = vpop.f32.mrf.mxu0 }
 0x55e   :  { %v1703_v20 = vpack.c.bf16 %v2334_v12, %v2333_v44 }
 0x55f   :  { %v1642_v23 = vpop.f32.mrf.mxu0 }
 0x560   :  { %v1702_v37 = vpack.c.bf16 %v1642_v23, %v1639_v26 }
 0x561   :  { %v2337_v25 = vpop.f32.mrf.mxu0 }
 0x563   :  { %v1655_v3 = vpop.f32.mrf.mxu0 }
 0x565   :  { %v2338_v29 = vpop.f32.mrf.mxu0 }
 0x566   :  { %v1705_v9 = vpack.c.bf16 %v2338_v29, %v2337_v25 }
 0x567   :  { %v1658_v49 = vpop.f32.mrf.mxu0 }
 0x568   :  { %v1704_v14 = vpack.c.bf16 %v1658_v49, %v1655_v3 }
 0x56e   :  { %v2341_v0 = vpop.f32.mrf.mxu0 }
 0x570   :  { %v1671_v56 = vpop.f32.mrf.mxu0 }
 0x572   :  { %v2342_v41 = vpop.f32.mrf.mxu0 }
 0x573   :  { %v1707_v53 = vpack.c.bf16 %v2342_v41, %v2341_v0 }
 0x574   :  { %v1674_v42 = vpop.f32.mrf.mxu0 }
 0x575   :  { %v1706_v55 = vpack.c.bf16 %v1674_v42, %v1671_v56 }
 0x581   :  { %v2345_v43 = vpop.f32.mrf.mxu0 }
 0x583   :  { %v1687_v16 = vpop.f32.mrf.mxu0 }
 0x585   :  { %v2346_v46 = vpop.f32.mrf.mxu0 }
 0x586   :  { %v1709_v22 = vpack.c.bf16 %v2346_v46, %v2345_v43 }
 0x587   :  { %v1690_v1 = vpop.f32.mrf.mxu0 }
 0x588   :  { %v1708_v61 = vpack.c.bf16 %v1690_v1, %v1687_v16  ;;  %2347 = vmatprep.subr.bf16.mxu1 %v1709_v22 }
 0x589   :  { %2348 = vmatpush3.bf16.msra.mxu1 %v1709_v22 }
 0x58a   :  { %2349 = vmatprep.subr.bf16.mxu1 %v1708_v61 }
 0x58d   :  { %2350 = vmatpush3.bf16.msra.mxu1 %v1708_v61 }
 0x58e   :  { %2351 = vmatprep.subr.bf16.mxu1 %v1707_v53 }
 0x591   :  { %2352 = vmatpush3.bf16.msra.mxu1 %v1707_v53 }
 0x592   :  { %2353 = vmatprep.subr.bf16.mxu1 %v1706_v55 }
 0x595   :  { %2354 = vmatpush3.bf16.msra.mxu1 %v1706_v55 }
 0x596   :  { %2355 = vmatprep.subr.bf16.mxu1 %v1705_v9 }
 0x599   :  { %2356 = vmatpush3.bf16.msra.mxu1 %v1705_v9 }
 0x59a   :  { %2357 = vmatprep.subr.bf16.mxu1 %v1704_v14 }
 0x59d   :  { %2358 = vmatpush3.bf16.msra.mxu1 %v1704_v14 }
 0x59e   :  { %2359 = vmatprep.subr.bf16.mxu1 %v1703_v20 }
 0x5a1   :  { %2360 = vmatpush3.bf16.msra.mxu1 %v1703_v20 }
 0x5a2   :  { %2361 = vmatprep.subr.bf16.mxu1 %v1702_v37 }
 0x5a5   :  { %2362 = vmatpush3.bf16.msra.mxu1 %v1702_v37 }
 0x5a8   :  { %2364 = vmatmul.mubr.bf16.vlgmr.msra.gmra.mxu1 %v2494_v30 }
 0x5a9   :  { %2367 = vmatprep.mubr.bf16.mxu1 %v2495_v45 }
 0x5b0   :  { %2368 = vmatmul.mubr.bf16.gmra.mxu1 %v2496_v4 }
 0x5b1   :  { %2371 = vmatprep.mubr.bf16.mxu1 %v2497_v39 }
 0x5b8   :  { %2372 = vmatmul.mubr.bf16.gmra.mxu1 %v2498_v24 }
 0x5b9   :  { %2375 = vmatprep.mubr.bf16.mxu1 %v2499_v28 }
 0x5c0   :  { %2376 = vmatmul.mubr.bf16.gmra.mxu1 %v2500_v50 }
 0x668   :  { %v2365_v31 = vpop.f32.mrf.mxu1 }
 0x669   :  { %v1757_v6 = vadd.f32 %v2365_v31, %v3283_v19 }
 0x66a   :  { %v1748_v47 = vpop.f32.mrf.mxu1 }
 0x66b   :  { %v1749_v48 = vadd.f32 %v1748_v47, %v3283_v19 }
 0x66c   :  { %v2366_v54 = vpop.f32.mrf.mxu1 }
 0x66d   :  { %v1760_v27 = vadd.f32 %v2366_v54, %v3283_v19 }
 0x66e   :  { %v1751_v2 = vpop.f32.mrf.mxu1 }
 0x66f   :  { %v1818_v51 = vmax.f32 %v1757_v6, %v1760_v27  ;;  %v1752_v18 = vadd.f32 %v1751_v2, %v3283_v19 }
 0x670   :  { %v2369_v5 = vpop.f32.mrf.mxu1 }
 0x671   :  { %v1811_v40 = vmax.f32 %v1749_v48, %v1752_v18  ;;  %v1819_v36 = vrot.slane %v1818_v51, 4  ;;  %v1773_v59 = vadd.f32 %v2369_v5, %v3283_v19 }
 0x672   :  { %v1764_v52 = vpop.f32.mrf.mxu1 }
 0x673   :  { %v1812_v57 = vrot.slane %v1811_v40, 4  ;;  %v1820_v32 = vmax.f32 %v1818_v51, %v1819_v36  ;;  %v1765_v44 = vadd.f32 %v1764_v52, %v3283_v19 }
 0x674   :  { %v2370_v58 = vpop.f32.mrf.mxu1 }
 0x675   :  { %v1776_v11 = vadd.f32 %v2370_v58, %v3283_v19  ;;  %v1813_v60 = vmax.f32 %v1811_v40, %v1812_v57  ;;  %v1821_v0 = vrot.slane %v1820_v32, 2 }
 0x676   :  { %v1767_v62 = vpop.f32.mrf.mxu1 }
 0x677   :  { %v1832_v26 = vmax.f32 %v1773_v59, %v1776_v11  ;;  %v1768_v12 = vadd.f32 %v1767_v62, %v3283_v19  ;;  %v1814_v29 = vrot.slane %v1813_v60, 2  ;;  %v1822_v61 = vmax.f32 %v1820_v32, %v1821_v0 }
 0x678   :  { %v2373_v23 = vpop.f32.mrf.mxu1 }
 0x679   :  { %v1833_v25 = vrot.slane %v1832_v26, 4  ;;  %v1825_v3 = vmax.f32 %v1765_v44, %v1768_v12  ;;  %v1815_v16 = vmax.f32 %v1813_v60, %v1814_v29  ;;  %v1789_v46 = vadd.f32 %v2373_v23, %v3283_v19 }
 0x67a   :  { %v1780_v49 = vpop.f32.mrf.mxu1  ;;  %v1823_v50 = vrot.slane %v1822_v61, 1 }
 0x67b   :  { %v1826_v56 = vrot.slane %v1825_v3, 4  ;;  %v1834_v41 = vmax.f32 %v1832_v26, %v1833_v25  ;;  %v1781_v9 = vadd.f32 %v1780_v49, %v3283_v19  ;;  %v1816_v45 = vrot.slane %v1815_v16, 1 }
 0x67c   :  { %v2374_v42 = vpop.f32.mrf.mxu1  ;;  %v1824_v27 = vmax.f32 %v1822_v61, %v1823_v50  ;;  %v1894_v50 = vrot.slane %v3278_v15, %v2880_v38 }
 0x67d   :  { %v1827_v43 = vmax.f32 %v1825_v3, %v1826_v56  ;;  %v1792_v22 = vadd.f32 %v2374_v42, %v3283_v19  ;;  %v1835_v55 = vrot.slane %v1834_v41, 2  ;;  %v1817_v8 = vmax.f32 %v1815_v16, %v1816_v45 }
 0x67e   :  { %v1783_v1 = vpop.f32.mrf.mxu1  ;;  %v1868_v59 = vpack.c.bf16 %v1824_v27, %v1824_v27 }
 0x67f   :  { %v1828_v53 = vrot.slane %v1827_v43, 2  ;;  %v1846_v14 = vmax.f32 %v1789_v46, %v1792_v22  ;;  %v1784_v20 = vadd.f32 %v1783_v1, %v3283_v19  ;;  %v1836_v34 = vmax.f32 %v1834_v41, %v1835_v55 }
 0x680   :  { %v2377_v37 = vpop.f32.mrf.mxu1  ;;  %v1867_v40 = vpack.c.bf16 %v1817_v8, %v1817_v8  ;;  %v1904_v3 = vunpack.c.l.b16 %v1868_v59 }
 0x681   :  { %v1829_v30 = vmax.f32 %v1827_v43, %v1828_v53  ;;  %v1847_v4 = vrot.slane %v1846_v14, 4  ;;  %v1839_v39 = vmax.f32 %v1781_v9, %v1784_v20  ;;  %v1805_v35 = vadd.f32 %v2377_v37, %v3283_v19 }
 0x682   :  { %v1796_v24 = vpop.f32.mrf.mxu1  ;;  %v1837_v2 = vrot.slane %v1836_v34, 1  ;;  %v1903_v26 = vunpack.c.l.b16 %v1867_v40 }
 0x683   :  { %v1830_v28 = vrot.slane %v1829_v30, 1  ;;  %v1848_v63 = vmax.f32 %v1846_v14, %v1847_v4  ;;  %v1840_v13 = vrot.slane %v1839_v39, 4  ;;  %v1797_v47 = vadd.f32 %v1796_v24, %v3283_v19 }
 0x684   :  { %v2378_v10 = vpop.f32.mrf.mxu1  ;;  %v1838_v11 = vmax.f32 %v1836_v34, %v1837_v2  ;;  %v1912_v42 = vsel %vm1911_vm1, %v1904_v3, %v1903_v26 }
 0x685   :  { %v1808_v33 = vadd.f32 %v2378_v10, %v3283_v19  ;;  %v1849_v17 = vrot.slane %v1848_v63, 2  ;;  %v1841_v21 = vmax.f32 %v1839_v39, %v1840_v13  ;;  %v1831_v7 = vmax.f32 %v1829_v30, %v1830_v28 }
 0x686   :  { %v1799_v31 = vpop.f32.mrf.mxu1  ;;  %v1870_v29 = vpack.c.bf16 %v1838_v11, %v1838_v11 }
 0x687   :  { %v1860_v54 = vmax.f32 %v1805_v35, %v1808_v33  ;;  %v1800_v6 = vadd.f32 %v1799_v31, %v3283_v19  ;;  %v1850_v48 = vmax.f32 %v1848_v63, %v1849_v17  ;;  %v1842_v51 = vrot.slane %v1841_v21, 2 }
 0x688   :  { %v1869_v36 = vpack.c.bf16 %v1831_v7, %v1831_v7  ;;  %v1906_v1 = vunpack.c.l.b16 %v1870_v29 }
 0x689   :  { %v1861_v18 = vrot.slane %v1860_v54, 4  ;;  %v1853_v5 = vmax.f32 %v1797_v47, %v1800_v6  ;;  %v1843_v52 = vmax.f32 %v1841_v21, %v1842_v51  ;;  %v1851_v60 = vrot.slane %v1850_v48, 1 }
 0x68a   :  { %v1905_v12 = vunpack.c.l.b16 %v1869_v36 }
 0x68b   :  { %v1862_v57 = vmax.f32 %v1860_v54, %v1861_v18  ;;  %v1854_v58 = vrot.slane %v1853_v5, 4  ;;  %v1844_v62 = vrot.slane %v1843_v52, 1  ;;  %v1852_v49 = vmax.f32 %v1850_v48, %v1851_v60 }
 0x68c   :  { %v1914_v43 = vsel %vm1913_vm2, %v1905_v12, %v1912_v42 }
 0x68d   :  { %v1863_v32 = vrot.slane %v1862_v57, 2  ;;  %v1855_v44 = vmax.f32 %v1853_v5, %v1854_v58  ;;  %v1845_v19 = vmax.f32 %v1843_v52, %v1844_v62  ;;  %v1872_v61 = vpack.c.bf16 %v1852_v49, %v1852_v49 }
 0x68e   :  { %v1916_v55 = vsel %vm1915_vm3, %v1906_v1, %v1914_v43 }
 0x68f   :  { %v1864_v23 = vmax.f32 %v1862_v57, %v1863_v32  ;;  %v1856_v25 = vrot.slane %v1855_v44, 2  ;;  %v1871_v0 = vpack.c.bf16 %v1845_v19, %v1845_v19  ;;  %v1908_v37 = vunpack.c.l.b16 %v1872_v61 }
 0x691   :  { %v1865_v56 = vrot.slane %v1864_v23, 1  ;;  %v1857_v41 = vmax.f32 %v1855_v44, %v1856_v25  ;;  %v1907_v16 = vunpack.c.l.b16 %v1871_v0 }
 0x693   :  { %v1866_v46 = vmax.f32 %v1864_v23, %v1865_v56  ;;  %v1858_v22 = vrot.slane %v1857_v41, 1  ;;  %v1918_v14 = vsel %vm1917_vm4, %v1907_v16, %v1916_v55 }
 0x694   :  { %v1920_v4 = vsel %vm1919_vm5, %v1908_v37, %v1918_v14 }
 0x695   :  { %v1859_v53 = vmax.f32 %v1857_v41, %v1858_v22  ;;  %v1874_v9 = vpack.c.bf16 %v1866_v46, %v1866_v46 }
 0x697   :  { %v1873_v20 = vpack.c.bf16 %v1859_v53, %v1859_v53  ;;  %v1910_v45 = vunpack.c.l.b16 %v1874_v9 }
 0x699   :  { %v1909_v30 = vunpack.c.l.b16 %v1873_v20 }
 0x69b   :  { %v1922_v39 = vsel %vm1921_vm6, %v1909_v30, %v1920_v4 }
 0x69c   :  { %v1924_v24 = vsel %vm1923_vm7, %v1910_v45, %v1922_v39 }
 0x69d   :  { %v1925_v28 = vpack.c.b16 %v1924_v24, %v1924_v24 }
 0x69f   :  { %2396 = vmatmul.mubr.bf16.vlgmr.msra.gmra.mxu0 %v1925_v28 }
 0x75f   :  { %v2009_v34 = vpop.f32.mrf.mxu0 }
 0x760   :  { %v2010_v63 = vadd.f32 %v2009_v34, %v1894_v50 }
 0x761   :  { %v2397_v13 = vpop.f32.mrf.mxu0 }
 0x762   :  { %2015 = vst [vmem:[#allocation14] sm:$0xff] %v2010_v63 }
 0x763   :  { %v2012_v10 = vpop.f32.mrf.mxu0 }
 0x764   :  { %2652 = shalt.err (!%p2649_p11)
}
 0x765   :  { %2025 = dma.vmem_to_hbm [thread:$0]  %s2023_s6, 128, %s3313_s7, [#allocation4]   ;;  %v2398_v38 = vpop.f32.mrf.mxu0 }
 0x766   :  { %2669 = dma.done.wait [#allocation4], 128  }
 0x767   :  { %2670 = vsyncadd [#allocation4], 4294967168 }
 0x768   :  { %2029 = vsyncpa [#allocation3], 1 }
 0x769   :  { %2030 = vsyncpa [#allocation6], 1 }
 0x76a   :  { %2031 = vsyncpa [#allocation9], 1 }
 0x76b   :  { %2032 = vsyncpa [#allocation12], 1 }
 0x76c   :  { %2033 = vsyncpa [#allocation4], 1 }

</bundles_post_ra>
